<compile_context>
chip_gen: v7x
topology: tpu7x:2x2x1
jax: 0.10.0
libtpu: 0.0.40
codegen_flags: <defaults>
</compile_context>

<pallas_src>
import functools

import jax
import jax.numpy as jnp
from jax import lax
from jax.experimental import pallas as pl
from jax.experimental.pallas import tpu as pltpu


def _round_up(v, m):
    return ((v + m - 1) // m) * m


def _residual_kernel(x_ref, w1_ref, b1_ref, gcol_ref, bcol_ref, w2_ref, b2_ref,
                     o_ref, *, num_hidden_layers, ln_eps, use_bf16_matmul):
    f32 = jnp.float32
    x = x_ref[...].astype(f32)          # (TB, E)  -- the residual identity
    w1 = w1_ref[...].astype(f32)        # (E, H)
    b1 = b1_ref[...].astype(f32)        # (1, H)
    gcol = gcol_ref[...].astype(f32)    # (H, 1)  LayerNorm weight (column layout)
    bcol = bcol_ref[...].astype(f32)    # (H, 1)  LayerNorm bias   (column layout)
    w2 = w2_ref[...].astype(f32)        # (H, E)
    b2 = b2_ref[...].astype(f32)        # (1, E)

    tb = x.shape[0]
    hidden = w1.shape[1]

    # ---- One-time (per grid step) prologue ---------------------------------
    # Fold the LayerNorm affine into Linear #2:
    #   (hn*gamma + beta) @ W2 + b2 == hn @ (gamma[:,None]*W2) + (beta @ W2 + b2)
    w2f = gcol * w2                                            # (H, E)
    b2f = jnp.sum(bcol * w2, axis=0, keepdims=True) + b2       # (1, E)
    # Residual + folded bias, broadcast once (hoisted out of the layer loop).
    xr = x + b2f                                               # (TB, E)
    b1_full = jnp.broadcast_to(b1, (tb, hidden))               # (TB, H)

    if use_bf16_matmul:
        mm = lambda a: a.astype(jnp.bfloat16)   # bf16 MXU inputs (v6e/v7x)
    else:
        mm = lambda a: a
    w1_mm = mm(w1)
    w2f_mm = mm(w2f)

    inv_h = jnp.float32(1.0 / hidden)

    def layer(out):
        # Linear(E->H) + ReLU                          (MXU + VPU)
        h = jnp.dot(mm(out), w1_mm, preferred_element_type=f32) + b1_full
        h = jnp.maximum(h, 0.0)
        # LayerNorm statistics (affine already folded into w2f/b2f); reuse d.
        mu = jnp.sum(h, axis=-1, keepdims=True) * inv_h
        d = h - mu
        var = jnp.sum(d * d, axis=-1, keepdims=True) * inv_h
        hn = d * lax.rsqrt(var + ln_eps)               # rsqrt -> EUP slot
        # Dropout: eval-mode identity.
        # TODO(synk): training-mode dropout (pltpu.prng_random_bits mask) not emitted.
        # Linear(H->E) + folded bias + residual add of the ORIGINAL input x.
        return jnp.dot(mm(hn), w2f_mm, preferred_element_type=f32) + xr

    # Fully unrolled at trace time (static, small trip count); equivalent to
    # lax.fori_loop(..., unroll=True) and gives the scheduler full visibility.
    out = x
    for _ in range(num_hidden_layers):
        out = layer(out)

    o_ref[...] = out.astype(o_ref.dtype)


def residual_net(x, w1, b1, gamma, beta, w2, b2, *, num_hidden_layers,
                 tb=256, ln_eps=1e-5, use_bf16_matmul=False):
    """x: (B, E).  w1: (E, H), w2: (H, E); biases / LN params (1, dim) or (dim,).

    Returns (B, E) in x.dtype.
    """
    B, E = x.shape
    H = w1.shape[1]

    # Effective batch tile: large enough to feed the MXU and amortize the
    # ~0.35us per-grid-step overhead, clamped to the (8-aligned) batch so small
    # batches don't over-pad.  Arbitrary B handled by zero padding + slicing.
    tb_eff = min(_round_up(tb, 8), _round_up(B, 8))
    Bp = _round_up(B, tb_eff)
    xp = x if Bp == B else jnp.pad(x, ((0, Bp - B), (0, 0)))

    # Layout plumbing only (no compute hoisted out of the kernel): biases as
    # (1, dim) rows, LayerNorm params as (H, 1) columns so the in-kernel affine
    # fold needs no lane<->sublane relayout.
    b1r = jnp.reshape(b1, (1, H)).astype(x.dtype)
    b2r = jnp.reshape(b2, (1, E)).astype(x.dtype)
    gcol = jnp.reshape(gamma, (H, 1)).astype(x.dtype)
    bcol = jnp.reshape(beta, (H, 1)).astype(x.dtype)

    kernel = functools.partial(_residual_kernel,
                               num_hidden_layers=num_hidden_layers,
                               ln_eps=ln_eps,
                               use_bf16_matmul=use_bf16_matmul)

    grid = (Bp // tb_eff,)
    # Weights/biases are replicated to every grid step; their block index is
    # constant so Pallas skips the re-DMA after the first step.  At these sizes
    # the default double-buffer costs a few hundred KiB of VMEM; for very large
    # E/H, single-buffer them (pipeline_mode=pl.Buffered(1)) or stage via
    # pl.ANY + manual copy and raise vmem_limit_bytes.
    rep = lambda shape: pl.BlockSpec(shape, lambda i: (0, 0))

    out = pl.pallas_call(
        kernel,
        out_shape=jax.ShapeDtypeStruct((Bp, E), x.dtype),
        grid_spec=pltpu.PrefetchScalarGridSpec(
            num_scalar_prefetch=0,
            grid=grid,
            in_specs=[
                pl.BlockSpec((tb_eff, E), lambda i: (i, 0)),   # x tile
                rep((E, H)),                                   # w1
                rep((1, H)),                                   # b1
                rep((H, 1)),                                   # gamma (column)
                rep((H, 1)),                                   # beta  (column)
                rep((H, E)),                                   # w2
                rep((1, E)),                                   # b2
            ],
            out_specs=pl.BlockSpec((tb_eff, E), lambda i: (i, 0)),
        ),
        compiler_params=pltpu.CompilerParams(
            dimension_semantics=("parallel",)),   # shards grid across TCs (v7x)
    )(xp, w1, b1r, gcol, bcol, w2, b2r)

    return out if Bp == B else out[:B]


def residual_net_ref(x, w1, b1, gamma, beta, w2, b2, *, num_hidden_layers,
                     ln_eps=1e-5):
    """Pure-JAX reference mirroring the PyTorch forward (eval mode)."""
    identity = x
    out = x
    g = jnp.reshape(gamma, (1, -1))
    be = jnp.reshape(beta, (1, -1))
    for _ in range(num_hidden_layers):
        h = out @ w1 + jnp.reshape(b1, (1, -1))
        h = jnp.maximum(h, 0.0)
        mu = jnp.mean(h, axis=-1, keepdims=True)
        var = jnp.mean((h - mu) ** 2, axis=-1, keepdims=True)
        h = (h - mu) / jnp.sqrt(var + ln_eps)
        h = h * g + be
        out = h @ w2 + jnp.reshape(b2, (1, -1)) + identity
    return out


if __name__ == "__main__":
    # Module hyper-params (synthetic, deterministic, small).
    embed_size = 128
    num_hidden_nodes = 256
    num_hidden_layers = 3
    # dropout_rate = 0.1  (inactive in eval mode)

    batch = 52   # not 8-aligned -> exercises the pad/slice path

    key = jax.random.PRNGKey(0)
    k_x, k_w1, k_b1, k_g, k_be, k_w2, k_b2 = jax.random.split(key, 7)

    x = jax.random.normal(k_x, (batch, embed_size), dtype=jnp.float32)

    # Deterministic parameter init (uniform, roughly PyTorch Linear scale).
    lim1 = 1.0 / (embed_size ** 0.5)
    lim2 = 1.0 / (num_hidden_nodes ** 0.5)
    w1 = jax.random.uniform(k_w1, (embed_size, num_hidden_nodes),
                            minval=-lim1, maxval=lim1, dtype=jnp.float32)
    b1 = jax.random.uniform(k_b1, (1, num_hidden_nodes),
                            minval=-lim1, maxval=lim1, dtype=jnp.float32)
    # Non-trivial LayerNorm affine so the in-kernel gamma/beta fold is exercised.
    gamma = 1.0 + 0.1 * jax.random.normal(k_g, (1, num_hidden_nodes), dtype=jnp.float32)
    beta = 0.1 * jax.random.normal(k_be, (1, num_hidden_nodes), dtype=jnp.float32)
    w2 = jax.random.uniform(k_w2, (num_hidden_nodes, embed_size),
                            minval=-lim2, maxval=lim2, dtype=jnp.float32)
    b2 = jax.random.uniform(k_b2, (1, embed_size),
                            minval=-lim2, maxval=lim2, dtype=jnp.float32)

    ref = residual_net_ref(x, w1, b1, gamma, beta, w2, b2,
                           num_hidden_layers=num_hidden_layers)

    # Default f32-MXU path: tight tolerance vs the f32 reference.
    out = residual_net(x, w1, b1, gamma, beta, w2, b2,
                       num_hidden_layers=num_hidden_layers)
    out = jax.block_until_ready(out)
    assert out.shape == (batch, embed_size)
    assert jnp.allclose(out, ref, atol=1e-4, rtol=1e-4), "f32 kernel mismatch vs reference"

    # Optional bf16-MXU path (v6e/v7x): f32 accumulation + f32 LN/residual;
    # checked at a loose tolerance consistent with bf16 input rounding.
    out_bf16 = residual_net(x, w1, b1, gamma, beta, w2, b2,
                            num_hidden_layers=num_hidden_layers,
                            use_bf16_matmul=True)
    out_bf16 = jax.block_until_ready(out_bf16)
    assert jnp.allclose(out_bf16, ref, atol=2.5e-1, rtol=1e-1), "bf16 kernel mismatch vs reference"

    print("KERNEL_OK")
</pallas_src>

<mosaic_0001>
module attributes {stable_mosaic.version = 11 : i64} {
  func.func @_residual_kernel(%arg0: i32, %arg1: memref<56x128xf32, #tpu.memory_space<vmem>>, %arg2: memref<128x256xf32, #tpu.memory_space<vmem>>, %arg3: memref<1x256xf32, #tpu.memory_space<vmem>>, %arg4: memref<256x1xf32, #tpu.memory_space<vmem>>, %arg5: memref<256x1xf32, #tpu.memory_space<vmem>>, %arg6: memref<256x128xf32, #tpu.memory_space<vmem>>, %arg7: memref<1x128xf32, #tpu.memory_space<vmem>>, %arg8: memref<56x128xf32, #tpu.memory_space<vmem>>) attributes {dimension_semantics = [#tpu.dimension_semantics<parallel>], iteration_bounds = array<i64: 1>, scalar_prefetch = 0 : i64, scratch_operands = 0 : i64, tpu.core_type = #tpu.core_type<tc>, window_params = [{transform_indices = @transform_0, window_bounds = array<i64: 56, 128>}, {pipeline_mode = #tpu.pipeline_mode<synchronous>, transform_indices = @transform_1, window_bounds = array<i64: 128, 256>}, {pipeline_mode = #tpu.pipeline_mode<synchronous>, transform_indices = @transform_2, window_bounds = array<i64: 1, 256>}, {pipeline_mode = #tpu.pipeline_mode<synchronous>, transform_indices = @transform_3, window_bounds = array<i64: 256, 1>}, {pipeline_mode = #tpu.pipeline_mode<synchronous>, transform_indices = @transform_4, window_bounds = array<i64: 256, 1>}, {pipeline_mode = #tpu.pipeline_mode<synchronous>, transform_indices = @transform_5, window_bounds = array<i64: 256, 128>}, {pipeline_mode = #tpu.pipeline_mode<synchronous>, transform_indices = @transform_6, window_bounds = array<i64: 1, 128>}, {transform_indices = @transform_7, window_bounds = array<i64: 56, 128>}]} {
    %c0 = arith.constant 0 : index
    %c0_0 = arith.constant 0 : index
    %0 = vector.load %arg1[%c0, %c0_0] : memref<56x128xf32, #tpu.memory_space<vmem>>, vector<56x128xf32>
    %c0_1 = arith.constant 0 : index
    %c0_2 = arith.constant 0 : index
    %1 = vector.load %arg2[%c0_1, %c0_2] : memref<128x256xf32, #tpu.memory_space<vmem>>, vector<128x256xf32>
    %c0_3 = arith.constant 0 : index
    %c0_4 = arith.constant 0 : index
    %2 = vector.load %arg3[%c0_3, %c0_4] : memref<1x256xf32, #tpu.memory_space<vmem>>, vector<1x256xf32>
    %c0_5 = arith.constant 0 : index
    %c0_6 = arith.constant 0 : index
    %3 = vector.load %arg4[%c0_5, %c0_6] : memref<256x1xf32, #tpu.memory_space<vmem>>, vector<256x1xf32>
    %c0_7 = arith.constant 0 : index
    %c0_8 = arith.constant 0 : index
    %4 = vector.load %arg5[%c0_7, %c0_8] : memref<256x1xf32, #tpu.memory_space<vmem>>, vector<256x1xf32>
    %c0_9 = arith.constant 0 : index
    %c0_10 = arith.constant 0 : index
    %5 = vector.load %arg6[%c0_9, %c0_10] : memref<256x128xf32, #tpu.memory_space<vmem>>, vector<256x128xf32>
    %c0_11 = arith.constant 0 : index
    %c0_12 = arith.constant 0 : index
    %6 = vector.load %arg7[%c0_11, %c0_12] : memref<1x128xf32, #tpu.memory_space<vmem>>, vector<1x128xf32>
    %7 = vector.broadcast %3 : vector<256x1xf32> to vector<256x128xf32>
    %8 = arith.mulf %7, %5 : vector<256x128xf32>
    %9 = vector.broadcast %4 : vector<256x1xf32> to vector<256x128xf32>
    %10 = arith.mulf %9, %5 : vector<256x128xf32>
    %cst = arith.constant dense<0.000000e+00> : vector<128xf32>
    %11 = vector.multi_reduction <add>, %10, %cst [0] : vector<256x128xf32> to vector<128xf32>
    %12 = vector.shape_cast %11 : vector<128xf32> to vector<1x128xf32>
    %13 = arith.addf %12, %6 : vector<1x128xf32>
    %14 = vector.broadcast %13 : vector<1x128xf32> to vector<56x128xf32>
    %15 = arith.addf %0, %14 : vector<56x128xf32>
    %16 = vector.shape_cast %2 : vector<1x256xf32> to vector<1x256xf32>
    %17 = vector.broadcast %16 : vector<1x256xf32> to vector<56x256xf32>
    %cst_13 = arith.constant dense<0.000000e+00> : vector<56x256xf32>
    %18 = tpu.matmul %0, %1, %cst_13 {dimension_numbers = #tpu.dot_dimension_numbers<[1], [0], [0], [1], [0, 0, 1, 1], [], []>} : vector<56x128xf32>, vector<128x256xf32>, vector<56x256xf32> -> vector<56x256xf32>
    %19 = arith.addf %18, %17 : vector<56x256xf32>
    %cst_14 = arith.constant 0.000000e+00 : f32
    %20 = vector.broadcast %cst_14 : f32 to vector<56x256xf32>
    %21 = arith.maximumf %19, %20 : vector<56x256xf32>
    %cst_15 = arith.constant dense<0.000000e+00> : vector<56xf32>
    %22 = vector.multi_reduction <add>, %21, %cst_15 [1] : vector<56x256xf32> to vector<56xf32>
    %23 = vector.shape_cast %22 : vector<56xf32> to vector<56x1xf32>
    %cst_16 = arith.constant 3.906250e-03 : f32
    %24 = vector.broadcast %cst_16 : f32 to vector<56x1xf32>
    %25 = arith.mulf %23, %24 : vector<56x1xf32>
    %26 = vector.broadcast %25 : vector<56x1xf32> to vector<56x256xf32>
    %27 = arith.subf %21, %26 : vector<56x256xf32>
    %28 = arith.mulf %27, %27 : vector<56x256xf32>
    %cst_17 = arith.constant dense<0.000000e+00> : vector<56xf32>
    %29 = vector.multi_reduction <add>, %28, %cst_17 [1] : vector<56x256xf32> to vector<56xf32>
    %30 = vector.shape_cast %29 : vector<56xf32> to vector<56x1xf32>
    %cst_18 = arith.constant 3.906250e-03 : f32
    %31 = vector.broadcast %cst_18 : f32 to vector<56x1xf32>
    %32 = arith.mulf %30, %31 : vector<56x1xf32>
    %cst_19 = arith.constant 9.99999974E-6 : f32
    %33 = vector.broadcast %cst_19 : f32 to vector<56x1xf32>
    %34 = arith.addf %32, %33 : vector<56x1xf32>
    %35 = math.rsqrt %34 : vector<56x1xf32>
    %36 = vector.broadcast %35 : vector<56x1xf32> to vector<56x256xf32>
    %37 = arith.mulf %27, %36 : vector<56x256xf32>
    %cst_20 = arith.constant dense<0.000000e+00> : vector<56x128xf32>
    %38 = tpu.matmul %37, %8, %cst_20 {dimension_numbers = #tpu.dot_dimension_numbers<[1], [0], [0], [1], [0, 0, 1, 1], [], []>} : vector<56x256xf32>, vector<256x128xf32>, vector<56x128xf32> -> vector<56x128xf32>
    %39 = arith.addf %38, %15 : vector<56x128xf32>
    %cst_21 = arith.constant dense<0.000000e+00> : vector<56x256xf32>
    %40 = tpu.matmul %39, %1, %cst_21 {dimension_numbers = #tpu.dot_dimension_numbers<[1], [0], [0], [1], [0, 0, 1, 1], [], []>} : vector<56x128xf32>, vector<128x256xf32>, vector<56x256xf32> -> vector<56x256xf32>
    %41 = arith.addf %40, %17 : vector<56x256xf32>
    %cst_22 = arith.constant 0.000000e+00 : f32
    %42 = vector.broadcast %cst_22 : f32 to vector<56x256xf32>
    %43 = arith.maximumf %41, %42 : vector<56x256xf32>
    %cst_23 = arith.constant dense<0.000000e+00> : vector<56xf32>
    %44 = vector.multi_reduction <add>, %43, %cst_23 [1] : vector<56x256xf32> to vector<56xf32>
    %45 = vector.shape_cast %44 : vector<56xf32> to vector<56x1xf32>
    %cst_24 = arith.constant 3.906250e-03 : f32
    %46 = vector.broadcast %cst_24 : f32 to vector<56x1xf32>
    %47 = arith.mulf %45, %46 : vector<56x1xf32>
    %48 = vector.broadcast %47 : vector<56x1xf32> to vector<56x256xf32>
    %49 = arith.subf %43, %48 : vector<56x256xf32>
    %50 = arith.mulf %49, %49 : vector<56x256xf32>
    %cst_25 = arith.constant dense<0.000000e+00> : vector<56xf32>
    %51 = vector.multi_reduction <add>, %50, %cst_25 [1] : vector<56x256xf32> to vector<56xf32>
    %52 = vector.shape_cast %51 : vector<56xf32> to vector<56x1xf32>
    %cst_26 = arith.constant 3.906250e-03 : f32
    %53 = vector.broadcast %cst_26 : f32 to vector<56x1xf32>
    %54 = arith.mulf %52, %53 : vector<56x1xf32>
    %cst_27 = arith.constant 9.99999974E-6 : f32
    %55 = vector.broadcast %cst_27 : f32 to vector<56x1xf32>
    %56 = arith.addf %54, %55 : vector<56x1xf32>
    %57 = math.rsqrt %56 : vector<56x1xf32>
    %58 = vector.broadcast %57 : vector<56x1xf32> to vector<56x256xf32>
    %59 = arith.mulf %49, %58 : vector<56x256xf32>
    %cst_28 = arith.constant dense<0.000000e+00> : vector<56x128xf32>
    %60 = tpu.matmul %59, %8, %cst_28 {dimension_numbers = #tpu.dot_dimension_numbers<[1], [0], [0], [1], [0, 0, 1, 1], [], []>} : vector<56x256xf32>, vector<256x128xf32>, vector<56x128xf32> -> vector<56x128xf32>
    %61 = arith.addf %60, %15 : vector<56x128xf32>
    %cst_29 = arith.constant dense<0.000000e+00> : vector<56x256xf32>
    %62 = tpu.matmul %61, %1, %cst_29 {dimension_numbers = #tpu.dot_dimension_numbers<[1], [0], [0], [1], [0, 0, 1, 1], [], []>} : vector<56x128xf32>, vector<128x256xf32>, vector<56x256xf32> -> vector<56x256xf32>
    %63 = arith.addf %62, %17 : vector<56x256xf32>
    %cst_30 = arith.constant 0.000000e+00 : f32
    %64 = vector.broadcast %cst_30 : f32 to vector<56x256xf32>
    %65 = arith.maximumf %63, %64 : vector<56x256xf32>
    %cst_31 = arith.constant dense<0.000000e+00> : vector<56xf32>
    %66 = vector.multi_reduction <add>, %65, %cst_31 [1] : vector<56x256xf32> to vector<56xf32>
    %67 = vector.shape_cast %66 : vector<56xf32> to vector<56x1xf32>
    %cst_32 = arith.constant 3.906250e-03 : f32
    %68 = vector.broadcast %cst_32 : f32 to vector<56x1xf32>
    %69 = arith.mulf %67, %68 : vector<56x1xf32>
    %70 = vector.broadcast %69 : vector<56x1xf32> to vector<56x256xf32>
    %71 = arith.subf %65, %70 : vector<56x256xf32>
    %72 = arith.mulf %71, %71 : vector<56x256xf32>
    %cst_33 = arith.constant dense<0.000000e+00> : vector<56xf32>
    %73 = vector.multi_reduction <add>, %72, %cst_33 [1] : vector<56x256xf32> to vector<56xf32>
    %74 = vector.shape_cast %73 : vector<56xf32> to vector<56x1xf32>
    %cst_34 = arith.constant 3.906250e-03 : f32
    %75 = vector.broadcast %cst_34 : f32 to vector<56x1xf32>
    %76 = arith.mulf %74, %75 : vector<56x1xf32>
    %cst_35 = arith.constant 9.99999974E-6 : f32
    %77 = vector.broadcast %cst_35 : f32 to vector<56x1xf32>
    %78 = arith.addf %76, %77 : vector<56x1xf32>
    %79 = math.rsqrt %78 : vector<56x1xf32>
    %80 = vector.broadcast %79 : vector<56x1xf32> to vector<56x256xf32>
    %81 = arith.mulf %71, %80 : vector<56x256xf32>
    %cst_36 = arith.constant dense<0.000000e+00> : vector<56x128xf32>
    %82 = tpu.matmul %81, %8, %cst_36 {dimension_numbers = #tpu.dot_dimension_numbers<[1], [0], [0], [1], [0, 0, 1, 1], [], []>} : vector<56x256xf32>, vector<256x128xf32>, vector<56x128xf32> -> vector<56x128xf32>
    %83 = arith.addf %82, %15 : vector<56x128xf32>
    %c0_37 = arith.constant 0 : index
    %c0_38 = arith.constant 0 : index
    %84 = vector.load %arg8[%c0_37, %c0_38] : memref<56x128xf32, #tpu.memory_space<vmem>>, vector<56x128xf32>
    tpu.vector_store %arg8[%c0_37, %c0_38], %83 {strides = array<i32>} : memref<56x128xf32, #tpu.memory_space<vmem>>, vector<56x128xf32>,
    return
  }
  func.func @transform_0(%arg0: i32) -> (i32, i32) {
    %c0_i32 = arith.constant 0 : i32
    %c0_i32_0 = arith.constant 0 : i32
    return %arg0, %c0_i32 : i32, i32
  }
  func.func @transform_1(%arg0: i32) -> (i32, i32) {
    %c0_i32 = arith.constant 0 : i32
    %c0_i32_0 = arith.constant 0 : i32
    %c0_i32_1 = arith.constant 0 : i32
    return %c0_i32, %c0_i32_0 : i32, i32
  }
  func.func @transform_2(%arg0: i32) -> (i32, i32) {
    %c0_i32 = arith.constant 0 : i32
    %c0_i32_0 = arith.constant 0 : i32
    %c0_i32_1 = arith.constant 0 : i32
    return %c0_i32, %c0_i32_0 : i32, i32
  }
  func.func @transform_3(%arg0: i32) -> (i32, i32) {
    %c0_i32 = arith.constant 0 : i32
    %c0_i32_0 = arith.constant 0 : i32
    %c0_i32_1 = arith.constant 0 : i32
    return %c0_i32, %c0_i32_0 : i32, i32
  }
  func.func @transform_4(%arg0: i32) -> (i32, i32) {
    %c0_i32 = arith.constant 0 : i32
    %c0_i32_0 = arith.constant 0 : i32
    %c0_i32_1 = arith.constant 0 : i32
    return %c0_i32, %c0_i32_0 : i32, i32
  }
  func.func @transform_5(%arg0: i32) -> (i32, i32) {
    %c0_i32 = arith.constant 0 : i32
    %c0_i32_0 = arith.constant 0 : i32
    %c0_i32_1 = arith.constant 0 : i32
    return %c0_i32, %c0_i32_0 : i32, i32
  }
  func.func @transform_6(%arg0: i32) -> (i32, i32) {
    %c0_i32 = arith.constant 0 : i32
    %c0_i32_0 = arith.constant 0 : i32
    %c0_i32_1 = arith.constant 0 : i32
    return %c0_i32, %c0_i32_0 : i32, i32
  }
  func.func @transform_7(%arg0: i32) -> (i32, i32) {
    %c0_i32 = arith.constant 0 : i32
    %c0_i32_0 = arith.constant 0 : i32
    return %arg0, %c0_i32 : i32, i32
  }
}

</mosaic_0001>

<bundles_post_ra>
// kernel: tpu_custom_call.1
= control target key start
LH: loop header
LB: loop body
LE: loop exit
PB: predicated region body
PF: predicated region fallthrough
CT: control target
= control target key end

     0   :  { %12 = vsyncpa [#allocation3], 0  ;;  %s3282_s0 = inlined_call_operand.hbm [shape: f32[56,128], index: 0, kind: input, shape index: {}]   ;;  %s3283_s1 = inlined_call_operand.vmem [shape: f32[128,256], index: 1, kind: input, shape index: {}]   ;;  %s3284_s2 = inlined_call_operand.vmem [shape: f32[1,256], index: 2, kind: input, shape index: {}]   ;;  %s3285_s3 = inlined_call_operand.vmem [shape: f32[256,1], index: 3, kind: input, shape index: {}]   ;;  %s3286_s4 = inlined_call_operand.vmem [shape: f32[256,1], index: 4, kind: input, shape index: {}]   ;;  %s3287_s5 = inlined_call_operand.vmem [shape: f32[256,128], index: 5, kind: input, shape index: {}]   ;;  %s3288_s6 = inlined_call_operand.vmem [shape: f32[1,128], index: 6, kind: input, shape index: {}]   ;;  %s3289_s7 = inlined_call_operand.hbm [shape: f32[56,128], index: 7, kind: output, shape index: {}]  }
   0x1   :  { %13 = vsyncpa [#allocation4], 0  ;;  %s2101_s24 = smov [#allocation2]   ;;  %s2053_s28 = scalar_lea.hbm %s3282_s0, 896 }
   0x2   :  { %s19_s25 = sshll.u32 %s2101_s24, 4  ;;  %p2054_p0 = scmp.ne.s32.totalorder %s3282_s0, %s2053_s28  ;;  %s20_s25 = int_to_ptr.vmem [resolvable:$true] %s19_s25 }
   0x3   :  { %p2057_p1 = scmp.lt.u32.totalorder %s2053_s28, %s3282_s0 }
   0x5   :  { %p2059_p2 = pnand %p2057_p1, %p2054_p0 }
   0x7   :  { %2062 = shalt.err (!%p2059_p2)
}
   0x8   :  { %s2063_s10 = scalar_lea.vmem %s20_s25, 896  ;;  %p2068_p4 = scmp.lt.s32.totalorder %s20_s25, %s20_s25 }
   0x9   :  { %p2064_p3 = scmp.ne.s32.totalorder %s20_s25, %s2063_s10  ;;  %p2069_p5 = scmp.lt.s32.totalorder %s2063_s10, %s2063_s10 }
   0xb   :  { %p2070_p6 = por %p2069_p5, %p2068_p4 }
   0xd   :  { %p2071_p7 = pnand %p2070_p6, %p2064_p3 }
   0xf   :  { %2074 = shalt.err (!%p2071_p7)
}
  0x10   :  { %s2102_s11 = smov 128   ;;  %s2103_s12 = smov 8  }
  0x11   :  { %25 = dma.hbm_to_vmem [thread:$0]  %s3282_s0, 896, %s20_s25, [#allocation3], %s2102_s11, %s2102_s11, %s2103_s12  }
  0x12   :  { %2097 = dma.done.wait [#allocation3], 896  }
  0x13   :  { %2098 = vsyncadd [#allocation3], 4294966400  ;;  %v3290_v0 = vmov 0.0   ;;  %v2105_v1 = vmov 0   ;;  %v49_v2 = vld [vmem:[%s3283_s1 + $0x8] sm:$0xff]  ;;  %v51_v3 = vld [vmem:[%s3283_s1 + $0x18] sm:$0xff] }
  0x14   :  { %686 = vmatprep.mubr.f32.mxu0 %v3290_v0  ;;  %2002 = vset.pattern.permute.xlu1 %v2105_v1  ;;  %v48_v4 = vld [vmem:[%s3283_s1] sm:$0xff]  ;;  %v2172_v5 = vpack.c.bf16 %v51_v3, %v49_v2  ;;  %v50_v6 = vld [vmem:[%s3283_s1 + $0x10] sm:$0xff]  ;;  %v53_v7 = vld [vmem:[%s3283_s1 + $0x28] sm:$0xff] }
  0x15   :  { %2003 = vset.pattern.permute.xlu0 %v2105_v1  ;;  %v55_v8 = vld [vmem:[%s3283_s1 + $0x38] sm:$0xff]  ;;  %v2183_v9 = vpack.c.bf16 %v50_v6, %v48_v4  ;;  %v52_v11 = vld [vmem:[%s3283_s1 + $0x20] sm:$0xff]  ;;  %v54_v12 = vld [vmem:[%s3283_s1 + $0x30] sm:$0xff] }
  0x16   :  { %v2185_v10 = vpack.c.bf16 %v55_v8, %v53_v7  ;;  %v57_v13 = vld [vmem:[%s3283_s1 + $0x48] sm:$0xff]  ;;  %1805 = vmatprep.subr.bf16.mxu0 %v2172_v5  ;;  %v59_v14 = vld [vmem:[%s3283_s1 + $0x58] sm:$0xff]  ;;  %v2201_v15 = vpack.c.bf16 %v54_v12, %v52_v11  ;;  %v56_v17 = vld [vmem:[%s3283_s1 + $0x40] sm:$0xff] }
  0x17   :  { %3340 = vst [vmem:[#allocation8_spill] sm:$0xff] %v2183_v9  ;;  %1807 = vmatpush1.bf16.msra.mxu0 %v2183_v9  ;;  %v2204_v16 = vpack.c.bf16 %v59_v14, %v57_v13  ;;  %v58_v18 = vld [vmem:[%s3283_s1 + $0x50] sm:$0xff]  ;;  %v61_v19 = vld [vmem:[%s3283_s1 + $0x68] sm:$0xff]  ;;  %v63_v20 = vld [vmem:[%s3283_s1 + $0x78] sm:$0xff] }
  0x18   :  { %3341 = vst [vmem:[#allocation9_spill] sm:$0xff] %v2185_v10  ;;  %3342 = vst [vmem:[#allocation10_spill] sm:$0xff] %v2201_v15  ;;  %1809 = vmatprep.subr.bf16.mxu0 %v2185_v10  ;;  %v2219_v21 = vpack.c.bf16 %v58_v18, %v56_v17  ;;  %v2222_v22 = vpack.c.bf16 %v63_v20, %v61_v19  ;;  %v60_v23 = vld [vmem:[%s3283_s1 + $0x60] sm:$0xff]  ;;  %v62_v24 = vld [vmem:[%s3283_s1 + $0x70] sm:$0xff] }
  0x19   :  { %3343 = vst [vmem:[#allocation11_spill] sm:$0xff] %v2204_v16  ;;  %v65_v25 = vld [vmem:[%s3283_s1 + $0x88] sm:$0xff]  ;;  %v67_v26 = vld [vmem:[%s3283_s1 + $0x98] sm:$0xff]  ;;  %v2237_v27 = vpack.c.bf16 %v62_v24, %v60_v23  ;;  %v97_v28 = vld [vmem:[%s3285_s3 + $0x80] sm:$0xff] }
  0x1a   :  { %3344 = vst [vmem:[#allocation12_spill] sm:$0xff] %v2219_v21  ;;  %3345 = vst [vmem:[#allocation13_spill] sm:$0xff] %v2222_v22  ;;  %v2243_v29 = vpack.c.bf16 %v67_v26, %v65_v25  ;;  %v64_v30 = vld [vmem:[%s3283_s1 + $0x80] sm:$0xff]  ;;  %v66_v31 = vld [vmem:[%s3283_s1 + $0x90] sm:$0xff]  ;;  %260 = vperm.xlu1 %2002, %v97_v28  }
  0x1b   :  { %1811 = vmatpush1.bf16.msra.mxu0 %v2201_v15  ;;  %3346 = vst [vmem:[#allocation14_spill] sm:$0xff] %v2237_v27  ;;  %v69_v32 = vld [vmem:[%s3283_s1 + $0xa8] sm:$0xff]  ;;  %v71_v33 = vld [vmem:[%s3283_s1 + $0xb8] sm:$0xff]  ;;  %v81_v34 = vld [vmem:[%s3285_s3] sm:$0xff]  ;;  %v2261_v35 = vpack.c.bf16 %v66_v31, %v64_v30 }
  0x1c   :  { %1813 = vmatprep.subr.bf16.mxu0 %v2204_v16  ;;  %3347 = vst [vmem:[#allocation15_spill] sm:$0xff] %v2243_v29  ;;  %v2264_v36 = vpack.c.bf16 %v71_v33, %v69_v32  ;;  %v68_v37 = vld [vmem:[%s3283_s1 + $0xa0] sm:$0xff]  ;;  %v70_v38 = vld [vmem:[%s3283_s1 + $0xb0] sm:$0xff]  ;;  %v98_v39 = vld [vmem:[%s3285_s3 + $0x88] sm:$0xff] }
  0x1d   :  { %3348 = vst [vmem:[#allocation16_spill] sm:$0xff] %v2261_v35  ;;  %v73_v40 = vld [vmem:[%s3283_s1 + $0xc8] sm:$0xff]  ;;  %v75_v41 = vld [vmem:[%s3283_s1 + $0xd8] sm:$0xff]  ;;  %265 = vperm.xlu0 %2003, %v98_v39   ;;  %v85_v43 = vld [vmem:[%s3285_s3 + $0x20] sm:$0xff]  ;;  %v2288_v44 = vpack.c.bf16 %v70_v38, %v68_v37 }
  0x1e   :  { %3349 = vst [vmem:[#allocation17_spill] sm:$0xff] %v2264_v36  ;;  %180 = vperm.xlu1 %2002, %v81_v34   ;;  %v82_v42 = vld [vmem:[%s3285_s3 + $0x8] sm:$0xff]  ;;  %v2291_v45 = vpack.c.bf16 %v75_v41, %v73_v40  ;;  %v72_v46 = vld [vmem:[%s3283_s1 + $0xc0] sm:$0xff]  ;;  %v74_v47 = vld [vmem:[%s3283_s1 + $0xd0] sm:$0xff] }
  0x1f   :  { %1815 = vmatpush1.bf16.msra.mxu0 %v2219_v21  ;;  %3350 = vst [vmem:[#allocation18_spill] sm:$0xff] %v2288_v44  ;;  %v77_v48 = vld [vmem:[%s3283_s1 + $0xe8] sm:$0xff]  ;;  %v79_v49 = vld [vmem:[%s3283_s1 + $0xf8] sm:$0xff]  ;;  %v99_v50 = vld [vmem:[%s3285_s3 + $0x90] sm:$0xff]  ;;  %v2312_v52 = vpack.c.bf16 %v74_v47, %v72_v46 }
  0x20   :  { %1817 = vmatprep.subr.bf16.mxu0 %v2222_v22  ;;  %3351 = vst [vmem:[#allocation19_spill] sm:$0xff] %v2291_v45  ;;  %v105_v51 = vld [vmem:[%s3285_s3 + $0xc0] sm:$0xff]  ;;  %v2315_v53 = vpack.c.bf16 %v79_v49, %v77_v48  ;;  %v78_v55 = vld [vmem:[%s3283_s1 + $0xf0] sm:$0xff]  ;;  %v100_v56 = vld [vmem:[%s3285_s3 + $0x98] sm:$0xff] }
  0x21   :  { %200 = vperm.xlu0 %2003, %v85_v43   ;;  %3352 = vst [vmem:[#allocation20_spill] sm:$0xff] %v2312_v52  ;;  %v76_v54 = vld [vmem:[%s3283_s1 + $0xe0] sm:$0xff]  ;;  %v106_v57 = vld [vmem:[%s3285_s3 + $0xc8] sm:$0xff]  ;;  %v83_v59 = vld [vmem:[%s3285_s3 + $0x10] sm:$0xff] }
  0x22   :  { %185 = vperm.xlu1 %2002, %v82_v42   ;;  %3353 = vst [vmem:[#allocation21_spill] sm:$0xff] %v2315_v53  ;;  %v2330_v58 = vpack.c.bf16 %v78_v55, %v76_v54  ;;  %v90_v60 = vld [vmem:[%s3285_s3 + $0x48] sm:$0xff]  ;;  %v41_v61 = vld [vmem:[#allocation2] sm:$0xff]  ;;  %v84_v62 = vld [vmem:[%s3285_s3 + $0x18] sm:$0xff] }
  0x23   :  { %1819 = vmatpush1.bf16.msra.mxu0 %v2237_v27  ;;  %v42_v63 = vld [vmem:[#allocation2 + $0x8] sm:$0xff]  ;;  %v101_v1 = vld [vmem:[%s3285_s3 + $0xa0] sm:$0xff]  ;;  %v43_v2 = vld [vmem:[#allocation2 + $0x10] sm:$0xff] }
  0x24   :  { %1821 = vmatprep.subr.bf16.mxu0 %v2243_v29  ;;  %3354 = vst [vmem:[#allocation22_spill] sm:$0xff] %v2330_v58  ;;  %v102_v3 = vld [vmem:[%s3285_s3 + $0xa8] sm:$0xff]  ;;  %v44_v4 = vld [vmem:[#allocation2 + $0x18] sm:$0xff]  ;;  %v45_v7 = vld [vmem:[#allocation2 + $0x20] sm:$0xff] }
  0x25   :  { %300 = vperm.xlu0 %2003, %v105_v51   ;;  %v86_v6 = vld [vmem:[%s3285_s3 + $0x28] sm:$0xff]  ;;  %v103_v8 = vld [vmem:[%s3285_s3 + $0xb0] sm:$0xff]  ;;  %v104_v12 = vld [vmem:[%s3285_s3 + $0xb8] sm:$0xff] }
  0x26   :  { %270 = vperm.xlu1 %2002, %v99_v50   ;;  %v46_v11 = vld [vmem:[#allocation2 + $0x28] sm:$0xff]  ;;  %v47_v13 = vld [vmem:[#allocation2 + $0x30] sm:$0xff]  ;;  %v88_v17 = vld [vmem:[%s3285_s3 + $0x38] sm:$0xff] }
  0x27   :  { %1823 = vmatpush1.bf16.msra.mxu0 %v2261_v35  ;;  %v87_v14 = vld [vmem:[%s3285_s3 + $0x30] sm:$0xff]  ;;  %v89_v18 = vld [vmem:[%s3285_s3 + $0x40] sm:$0xff]  ;;  %v108_v20 = vld [vmem:[%s3285_s3 + $0xd8] sm:$0xff] }
  0x28   :  { %1825 = vmatprep.subr.bf16.mxu0 %v2264_v36  ;;  %v107_v19 = vld [vmem:[%s3285_s3 + $0xd0] sm:$0xff]  ;;  %v2403_v24 = vld [vmem:[%s3287_s5 + $0x80] sm:$0xff]  ;;  %v2414_v30 = vld [vmem:[%s3287_s5 + $0x8] sm:$0xff] }
  0x29   :  { %305 = vperm.xlu0 %2003, %v106_v57   ;;  %v91_v23 = vld [vmem:[%s3285_s3 + $0x50] sm:$0xff]  ;;  %v2408_v25 = vld [vmem:[%s3287_s5] sm:$0xff]  ;;  %v2419_v31 = vld [vmem:[%s3287_s5 + $0x88] sm:$0xff] }
  0x2a   :  { %275 = vperm.xlu1 %2002, %v100_v56   ;;  %3355 = vst [vmem:[#allocation23_spill] sm:$0xff] %v2419_v31  ;;  %v2432_v41 = vld [vmem:[%s3287_s5 + $0x90] sm:$0xff]  ;;  %v2438_v43 = vld [vmem:[%s3287_s5 + $0x98] sm:$0xff] }
  0x2b   :  { %1827 = vmatpush1.bf16.msra.mxu0 %v2288_v44  ;;  %3356 = vst [vmem:[#allocation24_spill] sm:$0xff] %v2432_v41  ;;  %3357 = vst [vmem:[#allocation25_spill] sm:$0xff] %v2438_v43  ;;  %v2447_v50 = vld [vmem:[%s3287_s5 + $0x10] sm:$0xff]  ;;  %v2453_v54 = vld [vmem:[%s3287_s5 + $0x18] sm:$0xff] }
  0x2c   :  { %1829 = vmatprep.subr.bf16.mxu0 %v2291_v45 }
  0x2d   :  { %225 = vperm.xlu0 %2003, %v90_v60   ;;  %v2462_v60 = vld [vmem:[%s3287_s5 + $0xa0] sm:$0xff] }
  0x2e   :  { %190 = vperm.xlu1 %2002, %v83_v59   ;;  %3358 = vst [vmem:[#allocation26_spill] sm:$0xff] %v2462_v60 }
  0x2f   :  { %1831 = vmatpush1.bf16.msra.mxu0 %v2312_v52 }
  0x30   :  { %1833 = vmatprep.subr.bf16.mxu0 %v2315_v53 }
  0x32   :  { %195 = vperm.xlu1 %2002, %v84_v62   ;;  %v2468_v62 = vld [vmem:[%s3287_s5 + $0xa8] sm:$0xff] }
  0x33   :  { %1835 = vmatpush1.bf16.msra.mxu0 %v2330_v58  ;;  %3359 = vst [vmem:[#allocation27_spill] sm:$0xff] %v2468_v62 }
  0x34   :  { %1869 = vmatprep.subr.bf16.mxu0 %v2172_v5 }
  0x36   :  { %687 = vmatmul.mubr.f32.vlgmr.msra.gmra.mrb[0].mxu0 %v41_v61  ;;  %280 = vperm.xlu1 %2002, %v101_v1  }
  0x37   :  { %692 = vmatprep.mubr.f32.mxu0 %v3290_v0  ;;  %1871 = vmatpush1.bf16.msra.mxu0 %v2183_v9  ;;  %v112_v9 = vld [vmem:[%s3285_s3 + $0xf8] sm:$0xff] }
  0x38   :  { %1873 = vmatprep.subr.bf16.mxu0 %v2185_v10 }
  0x3a   :  { %693 = vmatmul.mubr.f32.gmra.mrb[2].mxu0 %v42_v63  ;;  %285 = vperm.xlu1 %2002, %v102_v3  }
  0x3b   :  { %698 = vmatprep.mubr.f32.mxu0 %v3290_v0  ;;  %1875 = vmatpush1.bf16.msra.mxu0 %v2201_v15 }
  0x3c   :  { %1877 = vmatprep.subr.bf16.mxu0 %v2204_v16 }
  0x3e   :  { %699 = vmatmul.mubr.f32.gmra.mrb[4].mxu0 %v43_v2  ;;  %205 = vperm.xlu1 %2002, %v86_v6   ;;  %v2474_v2 = vld [vmem:[%s3287_s5 + $0x20] sm:$0xff] }
  0x3f   :  { %704 = vmatprep.mubr.f32.mxu0 %v3290_v0  ;;  %1879 = vmatpush1.bf16.msra.mxu0 %v2219_v21 }
  0x40   :  { %1881 = vmatprep.subr.bf16.mxu0 %v2222_v22 }
  0x42   :  { %705 = vmatmul.mubr.f32.gmra.mrb[6].mxu0 %v44_v4  ;;  %290 = vperm.xlu1 %2002, %v103_v8   ;;  %v2480_v4 = vld [vmem:[%s3287_s5 + $0x28] sm:$0xff] }
  0x43   :  { %710 = vmatprep.mubr.f32.mxu0 %v3290_v0  ;;  %1883 = vmatpush1.bf16.msra.mxu0 %v2237_v27 }
  0x44   :  { %1885 = vmatprep.subr.bf16.mxu0 %v2243_v29 }
  0x46   :  { %711 = vmatmul.mubr.f32.gmra.mrb[8].mxu0 %v45_v7  ;;  %295 = vperm.xlu1 %2002, %v104_v12  }
  0x47   :  { %716 = vmatprep.mubr.f32.mxu0 %v3290_v0  ;;  %1887 = vmatpush1.bf16.msra.mxu0 %v2261_v35 }
  0x48   :  { %1889 = vmatprep.subr.bf16.mxu0 %v2264_v36 }
  0x4a   :  { %717 = vmatmul.mubr.f32.gmra.mrb[10].mxu0 %v46_v11  ;;  %210 = vperm.xlu1 %2002, %v87_v14   ;;  %v2492_v14 = vld [vmem:[%s3287_s5 + $0xb0] sm:$0xff] }
  0x4b   :  { %722 = vmatprep.mubr.f32.mxu0 %v3290_v0  ;;  %1891 = vmatpush1.bf16.msra.mxu0 %v2288_v44  ;;  %3360 = vst [vmem:[#allocation28_spill] sm:$0xff] %v2492_v14 }
  0x4c   :  { %1893 = vmatprep.subr.bf16.mxu0 %v2291_v45 }
  0x4e   :  { %723 = vmatmul.mubr.f32.gmra.mrb[12].mxu0 %v47_v13  ;;  %215 = vperm.xlu1 %2002, %v88_v17  }
  0x4f   :  { %1895 = vmatpush1.bf16.msra.mxu0 %v2312_v52  ;;  %1019 = vmatprep.mubr.f32.mxu0 %v3290_v0 }
  0x50   :  { %1897 = vmatprep.subr.bf16.mxu0 %v2315_v53 }
  0x52   :  { %220 = vperm.xlu1 %2002, %v89_v18  }
  0x53   :  { %1899 = vmatpush1.bf16.msra.mxu0 %v2330_v58 }
  0x54   :  { %1933 = vmatprep.subr.bf16.mxu0 %v2172_v5 }
  0x56   :  { %310 = vperm.xlu1 %2002, %v107_v19   ;;  %v2498_v19 = vld [vmem:[%s3287_s5 + $0xb8] sm:$0xff] }
  0x57   :  { %3361 = vst [vmem:[#allocation29_spill] sm:$0xff] %v2498_v19 }
  0x5a   :  { %315 = vperm.xlu1 %2002, %v108_v20  }
  0x5e   :  { %230 = vperm.xlu1 %2002, %v91_v23  }
  0x99   :  { %v261_v5 = vpop.permute.xlu1 %260 }
  0x9a   :  { %v354_v28 = vmul.f32 %v261_v5, %v2403_v24 }
  0x9c   :  { %v266_v32 = vpop.permute.xlu0 %265 }
  0x9d   :  { %v181_v26 = vpop.permute.xlu1 %180  ;;  %v355_v34 = vmul.f32 %v266_v32, %v2419_v31  ;;  %v2507_v32 = vld [vmem:[%s3287_s5 + $0xc0] sm:$0xff] }
  0x9e   :  { %v338_v33 = vmul.f32 %v181_v26, %v2408_v25  ;;  %3362 = vst [vmem:[#allocation30_spill] sm:$0xff] %v2507_v32 }
  0x9f   :  { %v2424_v39 = vpack.c.bf16 %v355_v34, %v354_v28  ;;  %v2517_v34 = vld [vmem:[%s3287_s5 + $0x30] sm:$0xff] }
  0xa0   :  { %v201_v6 = vpop.permute.xlu0 %200 }
  0xa1   :  { %v186_v37 = vpop.permute.xlu1 %185  ;;  %1837 = vmatprep.subr.bf16.mxu1 %v2424_v39  ;;  %v342_v8 = vmul.f32 %v201_v6, %v2474_v2 }
  0xa2   :  { %v339_v38 = vmul.f32 %v186_v37, %v2414_v30 }
  0xa4   :  { %v2426_v40 = vpack.c.bf16 %v339_v38, %v338_v33  ;;  %v301_v18 = vpop.permute.xlu0 %300  ;;  %v2512_v33 = vld [vmem:[%s3287_s5 + $0xc8] sm:$0xff]  ;;  %v2523_v38 = vld [vmem:[%s3287_s5 + $0x38] sm:$0xff] }
  0xa5   :  { %v271_v42 = vpop.permute.xlu1 %270  ;;  %3363 = vst [vmem:[#allocation31_spill] sm:$0xff] %v2512_v33 }
  0xa6   :  { %1839 = vmatpush3.bf16.msra.mxu1 %v2426_v40  ;;  %v356_v46 = vmul.f32 %v271_v42, %v2432_v41  ;;  %v362_v42 = vmul.f32 %v301_v18, %v2507_v32 }
  0xa8   :  { %v306_v26 = vpop.permute.xlu0 %305 }
  0xa9   :  { %v276_v47 = vpop.permute.xlu1 %275 }
  0xaa   :  { %v357_v48 = vmul.f32 %v276_v47, %v2438_v43 }
  0xac   :  { %v2442_v49 = vpack.c.bf16 %v357_v48, %v356_v46  ;;  %v363_v46 = vmul.f32 %v306_v26, %v2512_v33  ;;  %v600_v26 = vlaneseq }
  0xad   :  { %v191_v51 = vpop.permute.xlu1 %190 }
  0xae   :  { %1841 = vmatprep.subr.bf16.mxu1 %v2442_v49  ;;  %v340_v55 = vmul.f32 %v191_v51, %v2447_v50  ;;  %v2531_v51 = vld [vmem:[%s3287_s5 + $0x48] sm:$0xff] }
  0xb1   :  { %v196_v56 = vpop.permute.xlu1 %195 }
  0xb2   :  { %v341_v57 = vmul.f32 %v196_v56, %v2453_v54 }
  0xb4   :  { %v2457_v59 = vpack.c.bf16 %v341_v57, %v340_v55  ;;  %v226_v55 = vpop.permute.xlu0 %225  ;;  %v2537_v57 = vld [vmem:[%s3287_s5 + $0x40] sm:$0xff] }
  0xb5   :  { %v281_v61 = vpop.permute.xlu1 %280 }
  0xb6   :  { %1843 = vmatpush3.bf16.msra.mxu1 %v2457_v59  ;;  %v358_v63 = vmul.f32 %v281_v61, %v2462_v60  ;;  %v2539_v61 = vpack.c.bf16 %v363_v46, %v362_v42  ;;  %v80_v46 = vld [vmem:[%s3284_s2] sm:$0x3] }
  0xb9   :  { %v286_v1 = vpop.permute.xlu1 %285 }
  0xba   :  { %v359_v3 = vmul.f32 %v286_v1, %v2468_v62  ;;  %v347_v1 = vmul.f32 %v226_v55, %v2531_v51 }
  0xbc   :  { %v2482_v7 = vpack.c.bf16 %v359_v3, %v358_v63 }
  0xbd   :  { %v206_v11 = vpop.permute.xlu1 %205 }
  0xbe   :  { %v343_v12 = vmul.f32 %v206_v11, %v2480_v4  ;;  %1845 = vmatprep.subr.bf16.mxu1 %v2482_v7  ;;  %v2552_v11 = vld [vmem:[%s3287_s5 + $0xd0] sm:$0xff] }
  0xbf   :  { %3364 = vst [vmem:[#allocation32_spill] sm:$0xff] %v2552_v11 }
  0xc0   :  { %v2487_v13 = vpack.c.bf16 %v343_v12, %v342_v8 }
  0xc1   :  { %v291_v17 = vpop.permute.xlu1 %290 }
  0xc2   :  { %1847 = vmatpush3.bf16.msra.mxu1 %v2487_v13  ;;  %v360_v20 = vmul.f32 %v291_v17, %v2492_v14  ;;  %v2558_v17 = vld [vmem:[%s3287_s5 + $0xd8] sm:$0xff] }
  0xc3   :  { %3365 = vst [vmem:[#allocation33_spill] sm:$0xff] %v2558_v17 }
  0xc5   :  { %v296_v23 = vpop.permute.xlu1 %295 }
  0xc6   :  { %v361_v5 = vmul.f32 %v296_v23, %v2498_v19 }
  0xc8   :  { %v2502_v28 = vpack.c.bf16 %v361_v5, %v360_v20 }
  0xc9   :  { %v211_v37 = vpop.permute.xlu1 %210 }
  0xca   :  { %1849 = vmatprep.subr.bf16.mxu1 %v2502_v28  ;;  %v344_v47 = vmul.f32 %v211_v37, %v2517_v34  ;;  %v2565_v37 = vshrl.u32 %v600_v26, 7 }
  0xcc   :  { %3366 = vst [vmem:[#allocation34_spill] sm:$0xff] %v2565_v37  ;;  %v3292_v42 = vsub.s32 0, %v2565_v37 }
  0xcd   :  { %v216_v48 = vpop.permute.xlu1 %215 }
  0xce   :  { %v345_v56 = vmul.f32 %v216_v48, %v2523_v38  ;;  %v2574_v48 = vrot.slane %v80_v46, %v3292_v42 }
  0xd0   :  { %v2541_v63 = vpack.c.bf16 %v345_v56, %v344_v47  ;;  %v618_v47 = vsub.s32 1, %v2565_v37  ;;  %3367 = vst [vmem:[#allocation35_spill] sm:$0xff] %v2574_v48  ;;  %v96_v37 = vld [vmem:[%s3285_s3 + $0x78] sm:$0xff] }
  0xd1   :  { %v221_v3 = vpop.permute.xlu1 %220 }
  0xd2   :  { %v346_v6 = vmul.f32 %v221_v3, %v2537_v57  ;;  %1851 = vmatpush3.bf16.msra.mxu1 %v2541_v63  ;;  %v2576_v55 = vrot.slane %v80_v46, %v618_v47 }
  0xd3   :  { %1853 = vmatprep.subr.bf16.mxu1 %v2539_v61 }
  0xd4   :  { %v2547_v8 = vpack.c.bf16 %v347_v1, %v346_v6  ;;  %3368 = vst [vmem:[#allocation36_spill] sm:$0xff] %v2576_v55 }
  0xd5   :  { %v311_v12 = vpop.permute.xlu1 %310 }
  0xd6   :  { %1855 = vmatpush3.bf16.msra.mxu1 %v2547_v8  ;;  %v364_v18 = vmul.f32 %v311_v12, %v2552_v11 }
  0xd9   :  { %v316_v20 = vpop.permute.xlu1 %315 }
  0xda   :  { %v365_v23 = vmul.f32 %v316_v20, %v2558_v17 }
  0xdc   :  { %v2562_v5 = vpack.c.bf16 %v365_v23, %v364_v18 }
  0xdd   :  { %v231_v22 = vpop.permute.xlu1 %230 }
  0xde   :  { %1857 = vmatprep.subr.bf16.mxu1 %v2562_v5 }
 0x109   :  { %v688_v56 = vpop.f32.mrb[0].mxu0 }
 0x10a   :  { %v2579_v1 = vadd.f32 %v688_v56, %v2574_v48  ;;  %v690_v3 = vpop.f32.mrb[1].mxu0 }
 0x10b   :  { %v2582_v6 = vadd.f32 %v690_v3, %v2576_v55 }
 0x10c   :  { %v3295_v12 = vmax.f32 %v2579_v1, 0.0 }
 0x10d   :  { %v3294_v18 = vmax.f32 %v2582_v6, 0.0  ;;  %v694_v20 = vpop.f32.mrb[2].mxu0 }
 0x10e   :  { %v2587_v23 = vadd.f32 %v694_v20, %v2574_v48  ;;  %v696_v26 = vpop.f32.mrb[3].mxu0 }
 0x10f   :  { %v2590_v46 = vadd.f32 %v696_v26, %v2576_v55  ;;  %v743_v47 = vadd.f32 %v3294_v18, %v3295_v12 }
 0x110   :  { %v3299_v56 = vmax.f32 %v2587_v23, 0.0 }
 0x111   :  { %v3298_v3 = vmax.f32 %v2590_v46, 0.0  ;;  %v700_v0 = vpop.f32.mrb[4].mxu0  ;;  %744 = vadd.xlane.f32.xlu0 %v743_v47 }
 0x112   :  { %v2599_v42 = vadd.f32 %v700_v0, %v2574_v48  ;;  %v702_v20 = vpop.f32.mrb[5].mxu0 }
 0x113   :  { %v2602_v58 = vadd.f32 %v702_v20, %v2576_v55  ;;  %v746_v26 = vadd.f32 %v3298_v3, %v3299_v56 }
 0x114   :  { %v3303_v18 = vmax.f32 %v2599_v42, 0.0  ;;  %v3373_v15 = vmax.f32 %v2599_v42, 0.0 }
 0x115   :  { %v3302_v12 = vmax.f32 %v2602_v58, 0.0  ;;  %v706_v53 = vpop.f32.mrb[6].mxu0  ;;  %747 = vadd.xlane.f32.xlu0 %v746_v26 }
 0x116   :  { %v2611_v47 = vadd.f32 %v706_v53, %v2574_v48  ;;  %v708_v0 = vpop.f32.mrb[7].mxu0 }
 0x117   :  { %v2614_v52 = vadd.f32 %v708_v0, %v2576_v55  ;;  %v749_v20 = vadd.f32 %v3302_v12, %v3303_v18 }
 0x118   :  { %v3307_v3 = vmax.f32 %v2611_v47, 0.0 }
 0x119   :  { %v3306_v56 = vmax.f32 %v2614_v52, 0.0  ;;  %v712_v45 = vpop.f32.mrb[8].mxu0  ;;  %750 = vadd.xlane.f32.xlu1 %v749_v20 }
 0x11a   :  { %v2623_v26 = vadd.f32 %v712_v45, %v2574_v48  ;;  %v714_v53 = vpop.f32.mrb[9].mxu0 }
 0x11b   :  { %v2626_v44 = vadd.f32 %v714_v53, %v2576_v55  ;;  %v752_v0 = vadd.f32 %v3306_v56, %v3307_v3 }
 0x11c   :  { %v3313_v12 = vmax.f32 %v2623_v26, 0.0 }
 0x11d   :  { %v3312_v18 = vmax.f32 %v2626_v44, 0.0  ;;  %v718_v36 = vpop.f32.mrb[10].mxu0  ;;  %753 = vadd.xlane.f32.xlu1 %v752_v0  ;;  %v92_v0 = vld [vmem:[%s3285_s3 + $0x58] sm:$0xff] }
 0x11e   :  { %v2635_v20 = vadd.f32 %v718_v36, %v2574_v48  ;;  %v720_v45 = vpop.f32.mrb[11].mxu0 }
 0x11f   :  { %v2638_v35 = vadd.f32 %v720_v45, %v2576_v55  ;;  %v755_v53 = vadd.f32 %v3312_v18, %v3313_v12  ;;  %v109_v45 = vld [vmem:[%s3285_s3 + $0xe0] sm:$0xff] }
 0x120   :  { %v3311_v56 = vmax.f32 %v2635_v20, 0.0 }
 0x121   :  { %v3310_v3 = vmax.f32 %v2638_v35, 0.0  ;;  %756 = vadd.xlane.f32.xlu0 %v755_v53  ;;  %v724_v29 = vpop.f32.mrb[12].mxu0  ;;  %v110_v53 = vld [vmem:[%s3285_s3 + $0xe8] sm:$0xff] }
 0x122   :  { %v726_v27 = vpop.f32.mrb[13].mxu0 }
 0x123   :  { %v758_v36 = vadd.f32 %v3310_v3, %v3311_v56  ;;  %v93_v3 = vld [vmem:[%s3285_s3 + $0x60] sm:$0xff]  ;;  %v2666_v56 = vadd.f32 %v724_v29, %v2574_v48 }
 0x125   :  { %759 = vadd.xlane.f32.xlu1 %v758_v36  ;;  %v94_v36 = vld [vmem:[%s3285_s3 + $0x68] sm:$0xff] }
 0x136   :  { %235 = vperm.xlu1 %2002, %v92_v0   ;;  %v2669_v0 = vadd.f32 %v726_v27, %v2576_v55  ;;  %v3369_v27 = vmax.f32 %v2579_v1, 0.0  ;;  %v3370_v55 = vmax.f32 %v2582_v6, 0.0  ;;  %v3372_v1 = vmax.f32 %v2590_v46, 0.0 }
 0x137   :  { %320 = vperm.xlu0 %2003, %v109_v45   ;;  %v3322_v45 = vmax.f32 %v2666_v56, 0.0 }
 0x13b   :  { %325 = vperm.xlu0 %2003, %v110_v53   ;;  %v3321_v53 = vmax.f32 %v2669_v0, 0.0 }
 0x13f   :  { %240 = vperm.xlu0 %2003, %v93_v3   ;;  %v761_v3 = vadd.f32 %v3321_v53, %v3322_v45 }
 0x143   :  { %245 = vperm.xlu0 %2003, %v94_v36   ;;  %v111_v36 = vld [vmem:[%s3285_s3 + $0xf0] sm:$0xff] }
 0x162   :  { %762 = vadd.xlane.f32.xlu0 %v761_v3 }
 0x178   :  { %330 = vperm.xlu0 %2003, %v111_v36   ;;  %v3371_v36 = vmax.f32 %v2587_v23, 0.0  ;;  %v3374_v23 = vmax.f32 %v2602_v58, 0.0 }
 0x19e   :  { %v745_v29 = vpop.xlane.xlu0 %744 }
 0x19f   :  { %v764_v18 = vmul.f32 0.00390625, %v745_v29 }
 0x1a1   :  { %v2682_v12 = vsub.f32 %v3369_v27, %v764_v18  ;;  %v2686_v48 = vsub.f32 %v3370_v55, %v764_v18 }
 0x1a2   :  { %v748_v21 = vpop.xlane.xlu0 %747 }
 0x1a3   :  { %v765_v16 = vmul.f32 0.00390625, %v748_v21  ;;  %v785_v3 = vmul.f32 %v2682_v12, %v2682_v12  ;;  %v786_v53 = vmul.f32 %v2686_v48, %v2686_v48 }
 0x1a5   :  { %v2694_v29 = vsub.f32 %v3371_v36, %v765_v16  ;;  %v2698_v27 = vsub.f32 %v3372_v1, %v765_v16  ;;  %v799_v6 = vadd.f32 %v786_v53, %v785_v3 }
 0x1a6   :  { %v751_v55 = vpop.xlane.xlu1 %750 }
 0x1a7   :  { %v766_v18 = vmul.f32 0.00390625, %v751_v55  ;;  %800 = vadd.xlane.f32.xlu0 %v799_v6  ;;  %v787_v21 = vmul.f32 %v2694_v29, %v2694_v29  ;;  %v788_v45 = vmul.f32 %v2698_v27, %v2698_v27  ;;  %v3375_v6 = vmax.f32 %v2611_v47, 0.0 }
 0x1a8   :  { %v3378_v47 = vmax.f32 %v2626_v44, 0.0  ;;  %v2748_v44 = vld [vmem:[%s3287_s5 + $0x58] sm:$0xff] }
 0x1a9   :  { %v2706_v10 = vsub.f32 %v3373_v15, %v766_v18  ;;  %v2710_v36 = vsub.f32 %v3374_v23, %v766_v18  ;;  %v802_v16 = vadd.f32 %v788_v45, %v787_v21  ;;  %v3376_v15 = vmax.f32 %v2614_v52, 0.0 }
 0x1aa   :  { %v754_v46 = vpop.xlane.xlu1 %753 }
 0x1ab   :  { %v767_v53 = vmul.f32 0.00390625, %v754_v46  ;;  %803 = vadd.xlane.f32.xlu1 %v802_v16  ;;  %v789_v3 = vmul.f32 %v2706_v10, %v2706_v10  ;;  %v790_v1 = vmul.f32 %v2710_v36, %v2710_v36  ;;  %v3377_v16 = vmax.f32 %v2623_v26, 0.0 }
 0x1ad   :  { %v2718_v55 = vsub.f32 %v3375_v6, %v767_v53  ;;  %v2722_v42 = vsub.f32 %v3376_v15, %v767_v53  ;;  %v805_v58 = vadd.f32 %v790_v1, %v789_v3  ;;  %v2743_v15 = vld [vmem:[%s3287_s5 + $0x50] sm:$0xff] }
 0x1ae   :  { %v757_v18 = vpop.xlane.xlu0 %756 }
 0x1af   :  { %v768_v45 = vmul.f32 0.00390625, %v757_v18  ;;  %806 = vadd.xlane.f32.xlu0 %v805_v58  ;;  %v791_v21 = vmul.f32 %v2718_v55, %v2718_v55  ;;  %v792_v23 = vmul.f32 %v2722_v42, %v2722_v42 }
 0x1b1   :  { %v2730_v46 = vsub.f32 %v3377_v16, %v768_v45  ;;  %v2734_v6 = vsub.f32 %v3378_v47, %v768_v45  ;;  %v808_v52 = vadd.f32 %v792_v23, %v791_v21  ;;  %v348_v45 = vmul.f32 %v231_v22, %v2743_v15  ;;  %v2755_v23 = vld [vmem:[%s3287_s5 + $0xe0] sm:$0xff]  ;;  %v2760_v16 = vld [vmem:[%s3287_s5 + $0xe8] sm:$0xff] }
 0x1b2   :  { %v760_v53 = vpop.xlane.xlu1 %759  ;;  %3379 = vst [vmem:[#allocation37_spill] sm:$0xff] %v2755_v23  ;;  %3380 = vst [vmem:[#allocation38_spill] sm:$0xff] %v2760_v16 }
 0x1b3   :  { %809 = vadd.xlane.f32.xlu1 %v808_v52  ;;  %v793_v3 = vmul.f32 %v2730_v46, %v2730_v46  ;;  %v794_v1 = vmul.f32 %v2734_v6, %v2734_v6 }
 0x1b5   :  { %v811_v26 = vadd.f32 %v794_v1, %v793_v3 }
 0x1b6   :  { %v236_v58 = vpop.permute.xlu1 %235  ;;  %v321_v18 = vpop.permute.xlu0 %320 }
 0x1b7   :  { %v349_v21 = vmul.f32 %v236_v58, %v2748_v44  ;;  %812 = vadd.xlane.f32.xlu1 %v811_v26  ;;  %v366_v3 = vmul.f32 %v321_v18, %v2755_v23  ;;  %v2773_v58 = vld [vmem:[%s3287_s5 + $0x60] sm:$0xff] }
 0x1b9   :  { %v2762_v47 = vpack.c.bf16 %v349_v21, %v348_v45  ;;  %v2778_v45 = vld [vmem:[%s3287_s5 + $0x68] sm:$0xff]  ;;  %v95_v21 = vld [vmem:[%s3285_s3 + $0x70] sm:$0xff] }
 0x1ba   :  { %v326_v52 = vpop.permute.xlu0 %325 }
 0x1bb   :  { %v367_v22 = vmul.f32 %v326_v52, %v2760_v16  ;;  %1859 = vmatpush3.bf16.msra.mxu1 %v2762_v47  ;;  %v769_v16 = vmul.f32 0.00390625, %v760_v53 }
 0x1bd   :  { %v2767_v1 = vpack.c.bf16 %v367_v22, %v366_v3 }
 0x1be   :  { %v241_v26 = vpop.permute.xlu0 %240 }
 0x1bf   :  { %1861 = vmatprep.subr.bf16.mxu1 %v2767_v1  ;;  %v350_v52 = vmul.f32 %v241_v26, %v2773_v58  ;;  %v3381_v26 = vmax.f32 %v2635_v20, 0.0  ;;  %v3384_v20 = vmax.f32 %v2669_v0, 0.0  ;;  %v114_v0 = vld [vmem:[%s3286_s4 + $0x8] sm:$0xff] }
 0x1c1   :  { %v2796_v23 = vsub.f32 %v3381_v26, %v769_v16 }
 0x1c2   :  { %v246_v18 = vpop.permute.xlu0 %245 }
 0x1c3   :  { %v351_v3 = vmul.f32 %v246_v18, %v2778_v45  ;;  %v3382_v18 = vmax.f32 %v2638_v35, 0.0 }
 0x1c5   :  { %v2785_v22 = vpack.c.bf16 %v351_v3, %v350_v52  ;;  %250 = vperm.xlu0 %2003, %v95_v21   ;;  %v2800_v21 = vsub.f32 %v3382_v18, %v769_v16  ;;  %v795_v52 = vmul.f32 %v2796_v23, %v2796_v23 }
 0x1c7   :  { %1863 = vmatpush3.bf16.msra.mxu1 %v2785_v22  ;;  %v796_v3 = vmul.f32 %v2800_v21, %v2800_v21 }
 0x1c8   :  { %335 = vperm.xlu1 %2002, %v112_v9  }
 0x1c9   :  { %255 = vperm.xlu0 %2003, %v96_v37   ;;  %v814_v17 = vadd.f32 %v796_v3, %v795_v52  ;;  %v3383_v37 = vmax.f32 %v2666_v56, 0.0  ;;  %v116_v56 = vld [vmem:[%s3286_s4 + $0x18] sm:$0xff]  ;;  %v118_v52 = vld [vmem:[%s3286_s4 + $0x28] sm:$0xff]  ;;  %v117_v3 = vld [vmem:[%s3286_s4 + $0x20] sm:$0xff] }
 0x1e8   :  { %815 = vadd.xlane.f32.xlu0 %v814_v17  ;;  %v115_v17 = vld [vmem:[%s3286_s4 + $0x10] sm:$0xff] }
 0x1ef   :  { %v763_v11 = vpop.xlane.xlu0 %762 }
 0x1f0   :  { %v770_v9 = vmul.f32 0.00390625, %v763_v11  ;;  %v113_v11 = vld [vmem:[%s3286_s4] sm:$0xff] }
 0x1f2   :  { %v2808_v53 = vsub.f32 %v3383_v37, %v770_v9  ;;  %v2812_v26 = vsub.f32 %v3384_v20, %v770_v9  ;;  %v120_v9 = vld [vmem:[%s3286_s4 + $0x38] sm:$0xff]  ;;  %v119_v37 = vld [vmem:[%s3286_s4 + $0x30] sm:$0xff]  ;;  %v122_v20 = vld [vmem:[%s3286_s4 + $0x48] sm:$0xff] }
 0x1f4   :  { %v797_v35 = vmul.f32 %v2808_v53, %v2808_v53  ;;  %v798_v16 = vmul.f32 %v2812_v26, %v2812_v26 }
 0x1f6   :  { %v817_v18 = vadd.f32 %v798_v16, %v797_v35  ;;  %v121_v35 = vld [vmem:[%s3286_s4 + $0x40] sm:$0xff]  ;;  %v124_v16 = vld [vmem:[%s3286_s4 + $0x58] sm:$0xff] }
 0x1f8   :  { %818 = vadd.xlane.f32.xlu1 %v817_v18  ;;  %v123_v18 = vld [vmem:[%s3286_s4 + $0x50] sm:$0xff] }
 0x1fe   :  { %372 = vperm.xlu0 %2003, %v113_v11   ;;  %v126_v11 = vld [vmem:[%s3286_s4 + $0x68] sm:$0xff] }
 0x202   :  { %382 = vperm.xlu0 %2003, %v115_v17   ;;  %v125_v17 = vld [vmem:[%s3286_s4 + $0x60] sm:$0xff] }
 0x206   :  { %387 = vperm.xlu0 %2003, %v116_v56   ;;  %v128_v56 = vld [vmem:[%s3286_s4 + $0x78] sm:$0xff] }
 0x209   :  { %377 = vperm.xlu1 %2002, %v114_v0   ;;  %v127_v0 = vld [vmem:[%s3286_s4 + $0x70] sm:$0xff] }
 0x20a   :  { %397 = vperm.xlu0 %2003, %v118_v52   ;;  %v130_v52 = vld [vmem:[%s3286_s4 + $0x88] sm:$0xff] }
 0x20d   :  { %392 = vperm.xlu1 %2002, %v117_v3   ;;  %v129_v3 = vld [vmem:[%s3286_s4 + $0x80] sm:$0xff] }
 0x20e   :  { %407 = vperm.xlu0 %2003, %v120_v9   ;;  %v132_v9 = vld [vmem:[%s3286_s4 + $0x98] sm:$0xff] }
 0x211   :  { %402 = vperm.xlu1 %2002, %v119_v37   ;;  %v131_v37 = vld [vmem:[%s3286_s4 + $0x90] sm:$0xff] }
 0x212   :  { %417 = vperm.xlu0 %2003, %v122_v20   ;;  %v134_v20 = vld [vmem:[%s3286_s4 + $0xa8] sm:$0xff] }
 0x215   :  { %412 = vperm.xlu1 %2002, %v121_v35   ;;  %v133_v35 = vld [vmem:[%s3286_s4 + $0xa0] sm:$0xff] }
 0x216   :  { %427 = vperm.xlu0 %2003, %v124_v16   ;;  %v136_v16 = vld [vmem:[%s3286_s4 + $0xb8] sm:$0xff] }
 0x219   :  { %422 = vperm.xlu1 %2002, %v123_v18   ;;  %v135_v18 = vld [vmem:[%s3286_s4 + $0xb0] sm:$0xff] }
 0x21a   :  { %437 = vperm.xlu0 %2003, %v126_v11   ;;  %v138_v11 = vld [vmem:[%s3286_s4 + $0xc8] sm:$0xff] }
 0x21d   :  { %432 = vperm.xlu1 %2002, %v125_v17   ;;  %v331_v17 = vpop.permute.xlu0 %330 }
 0x21e   :  { %447 = vperm.xlu0 %2003, %v128_v56   ;;  %v137_v56 = vld [vmem:[%s3286_s4 + $0xc0] sm:$0xff] }
 0x221   :  { %442 = vperm.xlu1 %2002, %v127_v0   ;;  %v140_v0 = vld [vmem:[%s3286_s4 + $0xd8] sm:$0xff] }
 0x222   :  { %457 = vperm.xlu0 %2003, %v130_v52  }
 0x225   :  { %452 = vperm.xlu1 %2002, %v129_v3  }
 0x226   :  { %467 = vperm.xlu0 %2003, %v132_v9   ;;  %v139_v9 = vld [vmem:[%s3286_s4 + $0xd0] sm:$0xff] }
 0x229   :  { %462 = vperm.xlu1 %2002, %v131_v37  }
 0x22a   :  { %477 = vperm.xlu0 %2003, %v134_v20   ;;  %v142_v20 = vld [vmem:[%s3286_s4 + $0xe8] sm:$0xff] }
 0x22d   :  { %472 = vperm.xlu1 %2002, %v133_v35  }
 0x22e   :  { %487 = vperm.xlu0 %2003, %v136_v16   ;;  %v141_v16 = vld [vmem:[%s3286_s4 + $0xe0] sm:$0xff] }
 0x231   :  { %482 = vperm.xlu1 %2002, %v135_v18  }
 0x232   :  { %497 = vperm.xlu0 %2003, %v138_v11   ;;  %v144_v11 = vld [vmem:[%s3286_s4 + $0xf8] sm:$0xff] }
 0x234   :  { %v801_v52 = vpop.xlane.xlu0 %800 }
 0x235   :  { %v820_v3 = vmul.f32 0.00390625, %v801_v52  ;;  %492 = vperm.xlu1 %2002, %v137_v56  }
 0x236   :  { %507 = vperm.xlu0 %2003, %v140_v0   ;;  %v143_v0 = vld [vmem:[%s3286_s4 + $0xf0] sm:$0xff] }
 0x237   :  { %v827_v37 = vadd.f32 1e-05, %v820_v3 }
 0x238   :  { %v804_v35 = vpop.xlane.xlu1 %803 }
 0x239   :  { %2004 = vrsqrt.f32 %v827_v37  ;;  %502 = vperm.xlu1 %2002, %v139_v9   ;;  %v821_v18 = vmul.f32 0.00390625, %v804_v35 }
 0x23a   :  { %517 = vperm.xlu0 %2003, %v142_v20  }
 0x23b   :  { %v828_v52 = vadd.f32 1e-05, %v821_v18  ;;  %v2923_v18 = vld [vmem:[%s3287_s5 + $0x70] sm:$0xff] }
 0x23c   :  { %v807_v56 = vpop.xlane.xlu0 %806 }
 0x23d   :  { %512 = vperm.xlu1 %2002, %v141_v16   ;;  %v822_v3 = vmul.f32 0.00390625, %v807_v56  ;;  %2006 = vrsqrt.f32 %v828_v52  ;;  %v2918_v16 = vld [vmem:[%s3287_s5 + $0xf0] sm:$0xff] }
 0x23e   :  { %527 = vperm.xlu0 %2003, %v144_v11   ;;  %v2928_v11 = vld [vmem:[%s3287_s5 + $0xf8] sm:$0xff] }
 0x23f   :  { %v829_v20 = vadd.f32 1e-05, %v822_v3 }
 0x240   :  { %v810_v9 = vpop.xlane.xlu1 %809 }
 0x241   :  { %522 = vperm.xlu1 %2002, %v143_v0   ;;  %v823_v33 = vmul.f32 0.00390625, %v810_v9  ;;  %2008 = vrsqrt.f32 %v829_v20  ;;  %v368_v9 = vmul.f32 %v331_v17, %v2918_v16 }
 0x243   :  { %v2005_v37 = vpop.eup %2004  ;;  %v830_v56 = vadd.f32 1e-05, %v823_v33 }
 0x244   :  { %v813_v35 = vpop.xlane.xlu1 %812  ;;  %v251_v32 = vpop.permute.xlu0 %250  ;;  %v842_v19 = vmul.f32 %v2005_v37, %v2686_v48  ;;  %v2933_v48 = vld [vmem:[%s3287_s5 + $0x78] sm:$0xff] }
 0x245   :  { %v824_v0 = vmul.f32 0.00390625, %v813_v35  ;;  %v352_v14 = vmul.f32 %v251_v32, %v2923_v18  ;;  %2010 = vrsqrt.f32 %v830_v56  ;;  %v841_v32 = vmul.f32 %v2005_v37, %v2682_v12 }
 0x246   :  { %919 = vmatprep.mubr.f32.mxu1 %v842_v19 }
 0x247   :  { %v831_v60 = vadd.f32 1e-05, %v824_v0  ;;  %v2007_v31 = vpop.eup %2006 }
 0x248   :  { %v336_v52 = vpop.permute.xlu1 %335  ;;  %v256_v3 = vpop.permute.xlu0 %255  ;;  %v844_v33 = vmul.f32 %v2007_v31, %v2698_v27 }
 0x249   :  { %v369_v19 = vmul.f32 %v336_v52, %v2928_v11  ;;  %v353_v62 = vmul.f32 %v256_v3, %v2933_v48  ;;  %2012 = vrsqrt.f32 %v831_v60 }
 0x24b   :  { %v2939_v43 = vpack.c.bf16 %v369_v19, %v368_v9  ;;  %v2941_v41 = vpack.c.bf16 %v353_v62, %v352_v14  ;;  %v2009_v17 = vpop.eup %2008  ;;  %v843_v62 = vmul.f32 %v2007_v31, %v2694_v29 }
 0x24c   :  { %v846_v14 = vmul.f32 %v2009_v17, %v2710_v36  ;;  %v845_v60 = vmul.f32 %v2009_v17, %v2706_v10 }
 0x24d   :  { %1865 = vmatprep.subr.bf16.mxu1 %v2939_v43 }
 0x24e   :  { %1867 = vmatpush3.bf16.msra.mxu1 %v2941_v41 }
 0x24f   :  { %1901 = vmatprep.subr.bf16.mxu1 %v2424_v39  ;;  %v2011_v20 = vpop.eup %2010 }
 0x250   :  { %v848_v12 = vmul.f32 %v2011_v20, %v2722_v42  ;;  %v847_v31 = vmul.f32 %v2011_v20, %v2718_v55 }
 0x251   :  { %920 = vmatmul.mubr.f32.vlgmr.msra.gmra.mrb[0].mxu1 %v841_v32 }
 0x252   :  { %924 = vmatprep.mubr.f32.mxu1 %v844_v33  ;;  %1903 = vmatpush3.bf16.msra.mxu1 %v2426_v40 }
 0x253   :  { %1905 = vmatprep.subr.bf16.mxu1 %v2442_v49  ;;  %v2013_v27 = vpop.eup %2012 }
 0x254   :  { %v850_v29 = vmul.f32 %v2013_v27, %v2734_v6  ;;  %v849_v10 = vmul.f32 %v2013_v27, %v2730_v46 }
 0x255   :  { %925 = vmatmul.mubr.f32.gmra.mrb[2].mxu1 %v843_v62 }
 0x256   :  { %929 = vmatprep.mubr.f32.mxu1 %v846_v14  ;;  %1907 = vmatpush3.bf16.msra.mxu1 %v2457_v59 }
 0x257   :  { %1909 = vmatprep.subr.bf16.mxu1 %v2482_v7 }
 0x259   :  { %930 = vmatmul.mubr.f32.gmra.mrb[4].mxu1 %v845_v60 }
 0x25a   :  { %934 = vmatprep.mubr.f32.mxu1 %v848_v12  ;;  %1911 = vmatpush3.bf16.msra.mxu1 %v2487_v13 }
 0x25b   :  { %1913 = vmatprep.subr.bf16.mxu1 %v2502_v28 }
 0x25d   :  { %935 = vmatmul.mubr.f32.gmra.mrb[6].mxu1 %v847_v31 }
 0x25e   :  { %939 = vmatprep.mubr.f32.mxu1 %v850_v29  ;;  %1915 = vmatpush3.bf16.msra.mxu1 %v2541_v63 }
 0x25f   :  { %1917 = vmatprep.subr.bf16.mxu1 %v2539_v61 }
 0x261   :  { %940 = vmatmul.mubr.f32.gmra.mrb[8].mxu1 %v849_v10 }
 0x262   :  { %1919 = vmatpush3.bf16.msra.mxu1 %v2547_v8 }
 0x263   :  { %1921 = vmatprep.subr.bf16.mxu1 %v2562_v5 }
 0x266   :  { %1923 = vmatpush3.bf16.msra.mxu1 %v2762_v47 }
 0x267   :  { %1925 = vmatprep.subr.bf16.mxu1 %v2767_v1 }
 0x26a   :  { %1927 = vmatpush3.bf16.msra.mxu1 %v2785_v22 }
 0x26b   :  { %1929 = vmatprep.subr.bf16.mxu1 %v2939_v43 }
 0x26e   :  { %1931 = vmatpush3.bf16.msra.mxu1 %v2941_v41 }
 0x26f   :  { %1965 = vmatprep.subr.bf16.mxu1 %v2424_v39 }
 0x275   :  { %v816_v36 = vpop.xlane.xlu0 %815 }
 0x276   :  { %v825_v55 = vmul.f32 0.00390625, %v816_v36 }
 0x278   :  { %v832_v42 = vadd.f32 1e-05, %v825_v55 }
 0x27a   :  { %2014 = vrsqrt.f32 %v832_v42 }
 0x27d   :  { %v373_v46 = vpop.permute.xlu0 %372 }
 0x27e   :  { %v530_v19 = vmul.f32 %v373_v46, %v2408_v25 }
 0x281   :  { %v383_v52 = vpop.permute.xlu0 %382 }
 0x282   :  { %v532_v32 = vmul.f32 %v383_v52, %v2447_v50 }
 0x284   :  { %v2015_v6 = vpop.eup %2014 }
 0x285   :  { %v819_v37 = vpop.xlane.xlu1 %818  ;;  %v852_v35 = vmul.f32 %v2015_v6, %v2800_v21  ;;  %v851_v56 = vmul.f32 %v2015_v6, %v2796_v23  ;;  %v388_v17 = vpop.permute.xlu0 %387 }
 0x286   :  { %v826_v0 = vmul.f32 0.00390625, %v819_v37  ;;  %v533_v21 = vmul.f32 %v388_v17, %v2453_v54 }
 0x287   :  { %944 = vmatprep.mubr.f32.mxu1 %v852_v35 }
 0x288   :  { %v833_v3 = vadd.f32 1e-05, %v826_v0  ;;  %945 = vmatmul.mubr.f32.gmra.mrb[10].mxu1 %v851_v56 }
 0x289   :  { %v378_v9 = vpop.permute.xlu1 %377  ;;  %v398_v12 = vpop.permute.xlu0 %397 }
 0x28a   :  { %2016 = vrsqrt.f32 %v833_v3  ;;  %v531_v39 = vmul.f32 %v378_v9, %v2414_v30  ;;  %v535_v30 = vmul.f32 %v398_v12, %v2480_v4 }
 0x28c   :  { %v562_v33 = vadd.f32 %v531_v39, %v530_v19 }
 0x28d   :  { %v393_v14 = vpop.permute.xlu1 %392  ;;  %v408_v54 = vpop.permute.xlu0 %407 }
 0x28e   :  { %v563_v62 = vadd.f32 %v562_v33, %v532_v32  ;;  %v534_v60 = vmul.f32 %v393_v14, %v2474_v2  ;;  %v537_v55 = vmul.f32 %v408_v54, %v2523_v38 }
 0x290   :  { %v564_v23 = vadd.f32 %v563_v62, %v533_v21 }
 0x291   :  { %v403_v50 = vpop.permute.xlu1 %402 }
 0x292   :  { %v565_v31 = vadd.f32 %v564_v23, %v534_v60  ;;  %v536_v10 = vmul.f32 %v403_v50, %v2517_v34 }
 0x294   :  { %v2017_v20 = vpop.eup %2016  ;;  %v566_v29 = vadd.f32 %v565_v31, %v535_v30  ;;  %v3387_v30 = vld [vmem:[#allocation25_spill] sm:$0xff] }
 0x295   :  { %v854_v27 = vmul.f32 %v2017_v20, %v2812_v26  ;;  %v853_v25 = vmul.f32 %v2017_v20, %v2808_v53  ;;  %v413_v42 = vpop.permute.xlu1 %412  ;;  %v418_v26 = vpop.permute.xlu0 %417  ;;  %v3385_v20 = vld [vmem:[#allocation23_spill] sm:$0xff] }
 0x296   :  { %v567_v36 = vadd.f32 %v566_v29, %v536_v10  ;;  %v538_v46 = vmul.f32 %v413_v42, %v2537_v57  ;;  %v539_v53 = vmul.f32 %v418_v26, %v2531_v51  ;;  %v3388_v10 = vld [vmem:[#allocation26_spill] sm:$0xff] }
 0x297   :  { %949 = vmatprep.mubr.f32.mxu1 %v854_v27  ;;  %v3386_v27 = vld [vmem:[#allocation24_spill] sm:$0xff] }
 0x298   :  { %950 = vmatmul.mubr.f32.gmra.mrb[12].mxu1 %v853_v25  ;;  %v568_v2 = vadd.f32 %v567_v36, %v537_v55  ;;  %v3389_v55 = vld [vmem:[#allocation27_spill] sm:$0xff] }
 0x299   :  { %v423_v37 = vpop.permute.xlu1 %422  ;;  %v428_v56 = vpop.permute.xlu0 %427 }
 0x29a   :  { %v569_v6 = vadd.f32 %v568_v2, %v538_v46  ;;  %v540_v4 = vmul.f32 %v423_v37, %v2743_v15  ;;  %v541_v34 = vmul.f32 %v428_v56, %v2748_v44  ;;  %v3390_v46 = vld [vmem:[#allocation28_spill] sm:$0xff]  ;;  %v3391_v37 = vld [vmem:[#allocation29_spill] sm:$0xff] }
 0x29c   :  { %v570_v35 = vadd.f32 %v569_v6, %v539_v53 }
 0x29d   :  { %v433_v52 = vpop.permute.xlu1 %432  ;;  %v438_v9 = vpop.permute.xlu0 %437 }
 0x29e   :  { %v571_v0 = vadd.f32 %v570_v35, %v540_v4  ;;  %v542_v38 = vmul.f32 %v433_v52, %v2773_v58  ;;  %v543_v57 = vmul.f32 %v438_v9, %v2778_v45 }
 0x2a0   :  { %v572_v3 = vadd.f32 %v571_v0, %v541_v34  ;;  %v3392_v0 = vld [vmem:[#allocation30_spill] sm:$0xff] }
 0x2a1   :  { %v443_v39 = vpop.permute.xlu1 %442  ;;  %v448_v33 = vpop.permute.xlu0 %447 }
 0x2a2   :  { %v573_v19 = vadd.f32 %v572_v3, %v542_v38  ;;  %v544_v51 = vmul.f32 %v443_v39, %v2923_v18  ;;  %v545_v15 = vmul.f32 %v448_v33, %v2933_v48  ;;  %v3393_v38 = vld [vmem:[#allocation31_spill] sm:$0xff]  ;;  %v3394_v39 = vld [vmem:[#allocation32_spill] sm:$0xff] }
 0x2a4   :  { %v574_v32 = vadd.f32 %v573_v19, %v543_v57 }
 0x2a5   :  { %v453_v62 = vpop.permute.xlu1 %452  ;;  %v458_v14 = vpop.permute.xlu0 %457 }
 0x2a6   :  { %v575_v17 = vadd.f32 %v574_v32, %v544_v51  ;;  %v546_v44 = vmul.f32 %v453_v62, %v2403_v24  ;;  %v547_v58 = vmul.f32 %v458_v14, %v3385_v20 }
 0x2a8   :  { %v576_v21 = vadd.f32 %v575_v17, %v545_v15  ;;  %v3395_v17 = vld [vmem:[#allocation33_spill] sm:$0xff] }
 0x2a9   :  { %v463_v60 = vpop.permute.xlu1 %462  ;;  %v468_v25 = vpop.permute.xlu0 %467 }
 0x2aa   :  { %v577_v23 = vadd.f32 %v576_v21, %v546_v44  ;;  %v548_v45 = vmul.f32 %v463_v60, %v3386_v27  ;;  %v549_v18 = vmul.f32 %v468_v25, %v3387_v30  ;;  %v3396_v44 = vld [vmem:[#allocation37_spill] sm:$0xff] }
 0x2ac   :  { %v578_v12 = vadd.f32 %v577_v23, %v547_v58  ;;  %v3397_v58 = vld [vmem:[#allocation38_spill] sm:$0xff] }
 0x2ad   :  { %v473_v50 = vpop.permute.xlu1 %472  ;;  %v478_v54 = vpop.permute.xlu0 %477 }
 0x2ae   :  { %v579_v31 = vadd.f32 %v578_v12, %v548_v45  ;;  %v550_v48 = vmul.f32 %v473_v50, %v3388_v10  ;;  %v551_v24 = vmul.f32 %v478_v54, %v3389_v55  ;;  %v177_v55 = vld [vmem:[%s3288_s6] sm:$0x1]  ;;  %s2106_s6 = smov [#allocation5]  }
 0x2af   :  { %s1633_s15 = sshll.u32 %s2106_s6, 4  ;;  %s1634_s15 = int_to_ptr.vmem [resolvable:$true] %s1633_s15 }
 0x2b0   :  { %v580_v29 = vadd.f32 %v579_v31, %v549_v18  ;;  %s2075_s16 = scalar_lea.vmem %s1634_s15, 896  ;;  %p2080_p9 = scmp.lt.s32.totalorder %s1634_s15, %s1634_s15 }
 0x2b1   :  { %v483_v42 = vpop.permute.xlu1 %482  ;;  %v488_v6 = vpop.permute.xlu0 %487  ;;  %p2076_p8 = scmp.ne.s32.totalorder %s1634_s15, %s2075_s16  ;;  %p2081_p10 = scmp.lt.s32.totalorder %s2075_s16, %s2075_s16 }
 0x2b2   :  { %v581_v36 = vadd.f32 %v580_v29, %v550_v48  ;;  %v552_v26 = vmul.f32 %v483_v42, %v3390_v46  ;;  %v553_v35 = vmul.f32 %v488_v6, %v3391_v37  ;;  %v3398_v42 = vld [vmem:[#allocation34_spill] sm:$0xff] }
 0x2b3   :  { %v2046_v6 = vld [vmem:[#allocation2] sm:$0xff]  ;;  %p2082_p11 = por %p2081_p10, %p2080_p9 }
 0x2b4   :  { %v582_v2 = vadd.f32 %v581_v36, %v551_v24 }
 0x2b5   :  { %v493_v4 = vpop.permute.xlu1 %492  ;;  %v498_v52 = vpop.permute.xlu0 %497  ;;  %p2083_p12 = pnand %p2082_p11, %p2076_p8 }
 0x2b6   :  { %v583_v53 = vadd.f32 %v582_v2, %v552_v26  ;;  %v554_v34 = vmul.f32 %v493_v4, %v3392_v0  ;;  %v555_v9 = vmul.f32 %v498_v52, %v3393_v38  ;;  %v3399_v2 = vsub.s32 0, %v3398_v42 }
 0x2b7   :  { %v3400_v52 = vmov 0.0  }
 0x2b8   :  { %v584_v56 = vadd.f32 %v583_v53, %v553_v35 }
 0x2b9   :  { %v503_v19 = vpop.permute.xlu1 %502  ;;  %v508_v51 = vpop.permute.xlu0 %507 }
 0x2ba   :  { %v585_v3 = vadd.f32 %v584_v56, %v554_v34  ;;  %v556_v32 = vmul.f32 %v503_v19, %v3394_v39  ;;  %v557_v15 = vmul.f32 %v508_v51, %v3395_v17  ;;  %v2047_v56 = vld [vmem:[#allocation2 + $0x8] sm:$0xff]  ;;  %v3402_v19 = vld [vmem:[#allocation9_spill] sm:$0xff]  ;;  %v2048_v39 = vld [vmem:[#allocation2 + $0x10] sm:$0xff] }
 0x2bc   :  { %v586_v57 = vadd.f32 %v585_v3, %v555_v9  ;;  %v3401_v3 = vld [vmem:[#allocation8_spill] sm:$0xff] }
 0x2bd   :  { %v513_v62 = vpop.permute.xlu1 %512  ;;  %v518_v23 = vpop.permute.xlu0 %517 }
 0x2be   :  { %v587_v33 = vadd.f32 %v586_v57, %v556_v32  ;;  %v558_v14 = vmul.f32 %v513_v62, %v3396_v44  ;;  %v559_v60 = vmul.f32 %v518_v23, %v3397_v58  ;;  %v3404_v62 = vld [vmem:[#allocation11_spill] sm:$0xff]  ;;  %v2049_v44 = vld [vmem:[#allocation2 + $0x18] sm:$0xff] }
 0x2c0   :  { %v588_v21 = vadd.f32 %v587_v33, %v557_v15  ;;  %v3403_v33 = vld [vmem:[#allocation10_spill] sm:$0xff] }
 0x2c1   :  { %v523_v12 = vpop.permute.xlu1 %522  ;;  %v528_v25 = vpop.permute.xlu0 %527 }
 0x2c2   :  { %v589_v20 = vadd.f32 %v588_v21, %v558_v14  ;;  %v560_v45 = vmul.f32 %v523_v12, %v2918_v16  ;;  %v561_v30 = vmul.f32 %v528_v25, %v2928_v11  ;;  %v3406_v12 = vld [vmem:[#allocation13_spill] sm:$0xff] }
 0x2c4   :  { %v590_v27 = vadd.f32 %v589_v20, %v559_v60  ;;  %v3405_v20 = vld [vmem:[#allocation12_spill] sm:$0xff] }
 0x2c6   :  { %v591_v31 = vadd.f32 %v590_v27, %v560_v45  ;;  %v2050_v45 = vld [vmem:[#allocation2 + $0x20] sm:$0xff] }
 0x2c8   :  { %v592_v18 = vadd.f32 %v591_v31, %v561_v30  ;;  %v3407_v30 = vld [vmem:[#allocation14_spill] sm:$0xff] }
 0x2ca   :  { %v593_v50 = vrot.slane %v592_v18, 4 }
 0x2cc   :  { %v594_v29 = vadd.f32 %v593_v50, %v592_v18  ;;  %v3408_v50 = vld [vmem:[#allocation15_spill] sm:$0xff] }
 0x2ce   :  { %v595_v10 = vrot.slane %v594_v29, 2 }
 0x2d0   :  { %v596_v48 = vadd.f32 %v595_v10, %v594_v29  ;;  %v3409_v29 = vld [vmem:[#allocation16_spill] sm:$0xff]  ;;  %v3410_v10 = vld [vmem:[#allocation17_spill] sm:$0xff] }
 0x2d2   :  { %v597_v54 = vrot.slane %v596_v48, 1 }
 0x2d4   :  { %v598_v36 = vadd.f32 %v597_v54, %v596_v48  ;;  %v3411_v48 = vld [vmem:[#allocation18_spill] sm:$0xff]  ;;  %v3412_v54 = vld [vmem:[#allocation19_spill] sm:$0xff] }
 0x2d6   :  { %v599_v24 = vadd.f32 %v598_v36, %v177_v55  ;;  %v3413_v36 = vld [vmem:[#allocation20_spill] sm:$0xff]  ;;  %v3414_v55 = vld [vmem:[#allocation21_spill] sm:$0xff] }
 0x2d8   :  { %v3012_v46 = vrot.slane %v599_v24, %v3399_v2  ;;  %v3415_v24 = vld [vmem:[#allocation22_spill] sm:$0xff] }
 0x2da   :  { %v3015_v11 = vadd.f32 %v2046_v6, %v3012_v46  ;;  %v3019_v0 = vadd.f32 %v2047_v56, %v3012_v46  ;;  %v3026_v32 = vadd.f32 %v2048_v39, %v3012_v46  ;;  %v3033_v14 = vadd.f32 %v2049_v44, %v3012_v46  ;;  %v3417_v39 = vld [vmem:[#allocation36_spill] sm:$0xff] }
 0x2db   :  { %v3040_v25 = vadd.f32 %v2050_v45, %v3012_v46 }
 0x324   :  { %v1677_v16 = vpop.f32.mrb[0].mxu1 }
 0x325   :  { %v1678_v26 = vpop.f32.mrb[1].mxu1 }
 0x326   :  { %v1679_v53 = vadd.f32 %v1678_v26, %v1677_v16  ;;  %v2051_v16 = vld [vmem:[#allocation2 + $0x28] sm:$0xff] }
 0x327   :  { %v3055_v26 = vadd.f32 %v2051_v16, %v3012_v46 }
 0x328   :  { %v922_v37 = vadd.f32 %v1679_v53, %v3015_v11  ;;  %v1680_v35 = vpop.f32.mrb[2].mxu1 }
 0x329   :  { %v1681_v4 = vpop.f32.mrb[3].mxu1 }
 0x32a   :  { %v1682_v34 = vadd.f32 %v1681_v4, %v1680_v35  ;;  %1020 = vmatmul.mubr.f32.vlgmr.msra.gmra.mrb[14].mxu0 %v922_v37  ;;  %v2052_v4 = vld [vmem:[#allocation2 + $0x30] sm:$0xff] }
 0x32b   :  { %1025 = vmatprep.mubr.f32.mxu0 %v3400_v52  ;;  %1935 = vmatpush1.bf16.msra.mxu0 %v3401_v3  ;;  %v3060_v56 = vadd.f32 %v2052_v4, %v3012_v46 }
 0x32c   :  { %v927_v38 = vadd.f32 %v1682_v34, %v3019_v0  ;;  %v1683_v9 = vpop.f32.mrb[4].mxu1  ;;  %1937 = vmatprep.subr.bf16.mxu0 %v3402_v19 }
 0x32d   :  { %v1684_v57 = vpop.f32.mrb[5].mxu1 }
 0x32e   :  { %v1685_v51 = vadd.f32 %v1684_v57, %v1683_v9  ;;  %1026 = vmatmul.mubr.f32.gmra.mrb[16].mxu0 %v927_v38  ;;  %v3416_v9 = vld [vmem:[#allocation35_spill] sm:$0xff] }
 0x32f   :  { %1031 = vmatprep.mubr.f32.mxu0 %v3400_v52  ;;  %1939 = vmatpush1.bf16.msra.mxu0 %v3403_v33 }
 0x330   :  { %v932_v17 = vadd.f32 %v1685_v51, %v3026_v32  ;;  %v1686_v15 = vpop.f32.mrb[6].mxu1  ;;  %1941 = vmatprep.subr.bf16.mxu0 %v3404_v62 }
 0x331   :  { %v1687_v21 = vpop.f32.mrb[7].mxu1 }
 0x332   :  { %v1688_v23 = vadd.f32 %v1687_v21, %v1686_v15  ;;  %1032 = vmatmul.mubr.f32.gmra.mrb[18].mxu0 %v932_v17 }
 0x333   :  { %1037 = vmatprep.mubr.f32.mxu0 %v3400_v52  ;;  %1943 = vmatpush1.bf16.msra.mxu0 %v3405_v20 }
 0x334   :  { %v937_v58 = vadd.f32 %v1688_v23, %v3033_v14  ;;  %v1689_v60 = vpop.f32.mrb[8].mxu1  ;;  %1945 = vmatprep.subr.bf16.mxu0 %v3406_v12 }
 0x335   :  { %v1690_v27 = vpop.f32.mrb[9].mxu1 }
 0x336   :  { %v1691_v31 = vadd.f32 %v1690_v27, %v1689_v60  ;;  %1038 = vmatmul.mubr.f32.gmra.mrb[20].mxu0 %v937_v58 }
 0x337   :  { %1043 = vmatprep.mubr.f32.mxu0 %v3400_v52  ;;  %1947 = vmatpush1.bf16.msra.mxu0 %v3407_v30 }
 0x338   :  { %v942_v18 = vadd.f32 %v1691_v31, %v3040_v25  ;;  %1949 = vmatprep.subr.bf16.mxu0 %v3408_v50 }
 0x33a   :  { %1044 = vmatmul.mubr.f32.gmra.mrb[22].mxu0 %v942_v18 }
 0x33b   :  { %1049 = vmatprep.mubr.f32.mxu0 %v3400_v52  ;;  %1951 = vmatpush1.bf16.msra.mxu0 %v3409_v29 }
 0x33c   :  { %1953 = vmatprep.subr.bf16.mxu0 %v3410_v10 }
 0x33f   :  { %1955 = vmatpush1.bf16.msra.mxu0 %v3411_v48 }
 0x340   :  { %1957 = vmatprep.subr.bf16.mxu0 %v3412_v54 }
 0x343   :  { %1959 = vmatpush1.bf16.msra.mxu0 %v3413_v36 }
 0x344   :  { %1961 = vmatprep.subr.bf16.mxu0 %v3414_v55 }
 0x347   :  { %1963 = vmatpush1.bf16.msra.mxu0 %v3415_v24 }
 0x35b   :  { %v1692_v42 = vpop.f32.mrb[10].mxu1 }
 0x35c   :  { %v1693_v2 = vpop.f32.mrb[11].mxu1 }
 0x35d   :  { %v1694_v6 = vadd.f32 %v1693_v2, %v1692_v42 }
 0x35f   :  { %v947_v53 = vadd.f32 %v1694_v6, %v3055_v26 }
 0x361   :  { %1050 = vmatmul.mubr.f32.gmra.mrb[24].mxu0 %v947_v53 }
 0x362   :  { %1055 = vmatprep.mubr.f32.mxu0 %v3400_v52 }
 0x36b   :  { %v1695_v37 = vpop.f32.mrb[12].mxu1 }
 0x36c   :  { %v1696_v35 = vpop.f32.mrb[13].mxu1 }
 0x36d   :  { %v1697_v34 = vadd.f32 %v1696_v35, %v1695_v37 }
 0x36f   :  { %v952_v3 = vadd.f32 %v1697_v34, %v3060_v56 }
 0x371   :  { %1056 = vmatmul.mubr.f32.gmra.mrb[26].mxu0 %v952_v3 }
 0x372   :  { %1352 = vmatprep.mubr.f32.mxu0 %v3400_v52 }
 0x3fd   :  { %v1021_v38 = vpop.f32.mrb[14].mxu0 }
 0x3fe   :  { %v1022_v19 = vadd.f32 %v1021_v38, %v3416_v9  ;;  %v1023_v57 = vpop.f32.mrb[15].mxu0 }
 0x3ff   :  { %v1024_v51 = vadd.f32 %v1023_v57, %v3417_v39 }
 0x400   :  { %v1062_v33 = vmax.f32 %v1022_v19, 0.0 }
 0x401   :  { %v1063_v17 = vmax.f32 %v1024_v51, 0.0  ;;  %v1027_v15 = vpop.f32.mrb[16].mxu0 }
 0x402   :  { %v1028_v62 = vadd.f32 %v1027_v15, %v3416_v9  ;;  %v1029_v21 = vpop.f32.mrb[17].mxu0 }
 0x403   :  { %v1030_v46 = vadd.f32 %v1029_v21, %v3417_v39  ;;  %v1076_v44 = vadd.f32 %v1063_v17, %v1062_v33 }
 0x404   :  { %v1064_v23 = vmax.f32 %v1028_v62, 0.0 }
 0x405   :  { %v1065_v20 = vmax.f32 %v1030_v46, 0.0  ;;  %v1033_v58 = vpop.f32.mrb[18].mxu0  ;;  %1077 = vadd.xlane.f32.xlu1 %v1076_v44 }
 0x406   :  { %v1034_v60 = vadd.f32 %v1033_v58, %v3416_v9  ;;  %v1035_v12 = vpop.f32.mrb[19].mxu0 }
 0x407   :  { %v1036_v27 = vadd.f32 %v1035_v12, %v3417_v39  ;;  %v1079_v45 = vadd.f32 %v1065_v20, %v1064_v23 }
 0x408   :  { %v1066_v31 = vmax.f32 %v1034_v60, 0.0 }
 0x409   :  { %v1067_v30 = vmax.f32 %v1036_v27, 0.0  ;;  %v1039_v18 = vpop.f32.mrb[20].mxu0  ;;  %1080 = vadd.xlane.f32.xlu0 %v1079_v45 }
 0x40a   :  { %v1040_v50 = vadd.f32 %v1039_v18, %v3416_v9  ;;  %v1041_v29 = vpop.f32.mrb[21].mxu0 }
 0x40b   :  { %v1042_v10 = vadd.f32 %v1041_v29, %v3417_v39  ;;  %v1082_v48 = vadd.f32 %v1067_v30, %v1066_v31 }
 0x40c   :  { %v1068_v54 = vmax.f32 %v1040_v50, 0.0 }
 0x40d   :  { %v1069_v36 = vmax.f32 %v1042_v10, 0.0  ;;  %v1045_v55 = vpop.f32.mrb[22].mxu0  ;;  %1083 = vadd.xlane.f32.xlu0 %v1082_v48 }
 0x40e   :  { %v1046_v24 = vadd.f32 %v1045_v55, %v3416_v9  ;;  %v1047_v42 = vpop.f32.mrb[23].mxu0 }
 0x40f   :  { %v1048_v2 = vadd.f32 %v1047_v42, %v3417_v39  ;;  %v1085_v16 = vadd.f32 %v1069_v36, %v1068_v54 }
 0x410   :  { %v1070_v6 = vmax.f32 %v1046_v24, 0.0 }
 0x411   :  { %v1071_v53 = vmax.f32 %v1048_v2, 0.0  ;;  %1086 = vadd.xlane.f32.xlu1 %v1085_v16 }
 0x413   :  { %v1088_v37 = vadd.f32 %v1071_v53, %v1070_v6 }
 0x415   :  { %1089 = vadd.xlane.f32.xlu0 %v1088_v37 }
 0x434   :  { %v1051_v35 = vpop.f32.mrb[24].mxu0 }
 0x435   :  { %v1052_v4 = vadd.f32 %v1051_v35, %v3416_v9  ;;  %v1053_v34 = vpop.f32.mrb[25].mxu0 }
 0x436   :  { %v1054_v3 = vadd.f32 %v1053_v34, %v3417_v39 }
 0x437   :  { %v1072_v38 = vmax.f32 %v1052_v4, 0.0 }
 0x438   :  { %v1073_v19 = vmax.f32 %v1054_v3, 0.0 }
 0x43a   :  { %v1091_v57 = vadd.f32 %v1073_v19, %v1072_v38 }
 0x43c   :  { %1092 = vadd.xlane.f32.xlu1 %v1091_v57 }
 0x444   :  { %v1057_v51 = vpop.f32.mrb[26].mxu0 }
 0x445   :  { %v1058_v15 = vadd.f32 %v1057_v51, %v3416_v9  ;;  %v1059_v62 = vpop.f32.mrb[27].mxu0 }
 0x446   :  { %v1060_v21 = vadd.f32 %v1059_v62, %v3417_v39 }
 0x447   :  { %v1074_v46 = vmax.f32 %v1058_v15, 0.0 }
 0x448   :  { %v1075_v44 = vmax.f32 %v1060_v21, 0.0 }
 0x44a   :  { %v1094_v58 = vadd.f32 %v1075_v44, %v1074_v46 }
 0x44c   :  { %1095 = vadd.xlane.f32.xlu0 %v1094_v58 }
 0x492   :  { %v1078_v60 = vpop.xlane.xlu1 %1077 }
 0x493   :  { %v1097_v12 = vmul.f32 0.00390625, %v1078_v60 }
 0x495   :  { %v3078_v27 = vsub.f32 %v1062_v33, %v1097_v12  ;;  %v3080_v45 = vsub.f32 %v1063_v17, %v1097_v12 }
 0x496   :  { %v1081_v18 = vpop.xlane.xlu0 %1080 }
 0x497   :  { %v1098_v50 = vmul.f32 0.00390625, %v1081_v18  ;;  %v1118_v29 = vmul.f32 %v3078_v27, %v3078_v27  ;;  %v1119_v10 = vmul.f32 %v3080_v45, %v3080_v45 }
 0x499   :  { %v3086_v48 = vsub.f32 %v1064_v23, %v1098_v50  ;;  %v3088_v55 = vsub.f32 %v1065_v20, %v1098_v50  ;;  %v1132_v24 = vadd.f32 %v1119_v10, %v1118_v29 }
 0x49a   :  { %v1084_v42 = vpop.xlane.xlu0 %1083 }
 0x49b   :  { %v1099_v2 = vmul.f32 0.00390625, %v1084_v42  ;;  %1133 = vadd.xlane.f32.xlu1 %v1132_v24  ;;  %v1120_v33 = vmul.f32 %v3086_v48, %v3086_v48  ;;  %v1121_v17 = vmul.f32 %v3088_v55, %v3088_v55 }
 0x49d   :  { %v3094_v16 = vsub.f32 %v1066_v31, %v1099_v2  ;;  %v3096_v37 = vsub.f32 %v1067_v30, %v1099_v2  ;;  %v1135_v35 = vadd.f32 %v1121_v17, %v1120_v33 }
 0x49e   :  { %v1087_v4 = vpop.xlane.xlu1 %1086 }
 0x49f   :  { %v1100_v23 = vmul.f32 0.00390625, %v1087_v4  ;;  %1136 = vadd.xlane.f32.xlu0 %v1135_v35  ;;  %v1122_v20 = vmul.f32 %v3094_v16, %v3094_v16  ;;  %v1123_v34 = vmul.f32 %v3096_v37, %v3096_v37 }
 0x4a1   :  { %v3102_v3 = vsub.f32 %v1068_v54, %v1100_v23  ;;  %v3104_v57 = vsub.f32 %v1069_v36, %v1100_v23  ;;  %v1138_v51 = vadd.f32 %v1123_v34, %v1122_v20 }
 0x4a2   :  { %v1090_v15 = vpop.xlane.xlu0 %1089 }
 0x4a3   :  { %v1101_v31 = vmul.f32 0.00390625, %v1090_v15  ;;  %1139 = vadd.xlane.f32.xlu1 %v1138_v51  ;;  %v1124_v30 = vmul.f32 %v3102_v3, %v3102_v3  ;;  %v1125_v62 = vmul.f32 %v3104_v57, %v3104_v57 }
 0x4a5   :  { %v3110_v21 = vsub.f32 %v1070_v6, %v1101_v31  ;;  %v3112_v58 = vsub.f32 %v1071_v53, %v1101_v31  ;;  %v1141_v60 = vadd.f32 %v1125_v62, %v1124_v30 }
 0x4a7   :  { %1142 = vadd.xlane.f32.xlu0 %v1141_v60  ;;  %v1126_v54 = vmul.f32 %v3110_v21, %v3110_v21  ;;  %v1127_v36 = vmul.f32 %v3112_v58, %v3112_v58 }
 0x4a9   :  { %v1144_v12 = vadd.f32 %v1127_v36, %v1126_v54 }
 0x4ab   :  { %1145 = vadd.xlane.f32.xlu1 %v1144_v12 }
 0x4c9   :  { %v1093_v18 = vpop.xlane.xlu1 %1092 }
 0x4ca   :  { %v1102_v50 = vmul.f32 0.00390625, %v1093_v18 }
 0x4cc   :  { %v3118_v29 = vsub.f32 %v1072_v38, %v1102_v50  ;;  %v3120_v10 = vsub.f32 %v1073_v19, %v1102_v50 }
 0x4ce   :  { %v1128_v6 = vmul.f32 %v3118_v29, %v3118_v29  ;;  %v1129_v53 = vmul.f32 %v3120_v10, %v3120_v10 }
 0x4d0   :  { %v1147_v24 = vadd.f32 %v1129_v53, %v1128_v6 }
 0x4d2   :  { %1148 = vadd.xlane.f32.xlu0 %v1147_v24 }
 0x4d9   :  { %v1096_v42 = vpop.xlane.xlu0 %1095 }
 0x4da   :  { %v1103_v2 = vmul.f32 0.00390625, %v1096_v42 }
 0x4dc   :  { %v3126_v33 = vsub.f32 %v1074_v46, %v1103_v2  ;;  %v3128_v17 = vsub.f32 %v1075_v44, %v1103_v2 }
 0x4de   :  { %v1130_v38 = vmul.f32 %v3126_v33, %v3126_v33  ;;  %v1131_v19 = vmul.f32 %v3128_v17, %v3128_v17 }
 0x4e0   :  { %v1150_v35 = vadd.f32 %v1131_v19, %v1130_v38 }
 0x4e2   :  { %1151 = vadd.xlane.f32.xlu1 %v1150_v35 }
 0x528   :  { %v1134_v4 = vpop.xlane.xlu1 %1133 }
 0x529   :  { %v1153_v23 = vmul.f32 0.00390625, %v1134_v4 }
 0x52b   :  { %v1160_v20 = vadd.f32 1e-05, %v1153_v23 }
 0x52c   :  { %v1137_v34 = vpop.xlane.xlu0 %1136 }
 0x52d   :  { %2018 = vrsqrt.f32 %v1160_v20  ;;  %v1154_v51 = vmul.f32 0.00390625, %v1137_v34 }
 0x52f   :  { %v1161_v15 = vadd.f32 1e-05, %v1154_v51 }
 0x530   :  { %v1140_v31 = vpop.xlane.xlu1 %1139 }
 0x531   :  { %2020 = vrsqrt.f32 %v1161_v15  ;;  %v1155_v46 = vmul.f32 0.00390625, %v1140_v31 }
 0x533   :  { %v1162_v44 = vadd.f32 1e-05, %v1155_v46 }
 0x534   :  { %v1143_v30 = vpop.xlane.xlu0 %1142 }
 0x535   :  { %2022 = vrsqrt.f32 %v1162_v44  ;;  %v1156_v62 = vmul.f32 0.00390625, %v1143_v30 }
 0x537   :  { %v2019_v60 = vpop.eup %2018  ;;  %v1163_v54 = vadd.f32 1e-05, %v1156_v62 }
 0x538   :  { %v1146_v36 = vpop.xlane.xlu1 %1145  ;;  %v1175_v12 = vmul.f32 %v2019_v60, %v3080_v45  ;;  %v1174_v18 = vmul.f32 %v2019_v60, %v3078_v27 }
 0x539   :  { %2024 = vrsqrt.f32 %v1163_v54  ;;  %v1157_v50 = vmul.f32 0.00390625, %v1146_v36 }
 0x53a   :  { %1252 = vmatprep.mubr.f32.mxu1 %v1175_v12 }
 0x53b   :  { %v2021_v6 = vpop.eup %2020  ;;  %v1164_v53 = vadd.f32 1e-05, %v1157_v50  ;;  %1253 = vmatmul.mubr.f32.vlgmr.msra.gmra.mrb[14].mxu1 %v1174_v18 }
 0x53c   :  { %1967 = vmatpush3.bf16.msra.mxu1 %v2426_v40  ;;  %v1177_v24 = vmul.f32 %v2021_v6, %v3088_v55  ;;  %v1176_v42 = vmul.f32 %v2021_v6, %v3086_v48 }
 0x53d   :  { %2026 = vrsqrt.f32 %v1164_v53  ;;  %1969 = vmatprep.subr.bf16.mxu1 %v2442_v49 }
 0x53e   :  { %1257 = vmatprep.mubr.f32.mxu1 %v1177_v24 }
 0x53f   :  { %v2023_v2 = vpop.eup %2022  ;;  %1258 = vmatmul.mubr.f32.gmra.mrb[16].mxu1 %v1176_v42 }
 0x540   :  { %1971 = vmatpush3.bf16.msra.mxu1 %v2457_v59  ;;  %v1179_v27 = vmul.f32 %v2023_v2, %v3096_v37  ;;  %v1178_v45 = vmul.f32 %v2023_v2, %v3094_v16 }
 0x541   :  { %1973 = vmatprep.subr.bf16.mxu1 %v2482_v7 }
 0x542   :  { %1262 = vmatprep.mubr.f32.mxu1 %v1179_v27 }
 0x543   :  { %v2025_v40 = vpop.eup %2024  ;;  %1263 = vmatmul.mubr.f32.gmra.mrb[18].mxu1 %v1178_v45 }
 0x544   :  { %1975 = vmatpush3.bf16.msra.mxu1 %v2487_v13  ;;  %v1181_v48 = vmul.f32 %v2025_v40, %v3104_v57  ;;  %v1180_v49 = vmul.f32 %v2025_v40, %v3102_v3 }
 0x545   :  { %1977 = vmatprep.subr.bf16.mxu1 %v2502_v28 }
 0x546   :  { %1267 = vmatprep.mubr.f32.mxu1 %v1181_v48 }
 0x547   :  { %v2027_v55 = vpop.eup %2026  ;;  %1268 = vmatmul.mubr.f32.gmra.mrb[20].mxu1 %v1180_v49 }
 0x548   :  { %1979 = vmatpush3.bf16.msra.mxu1 %v2541_v63  ;;  %v1183_v59 = vmul.f32 %v2027_v55, %v3112_v58  ;;  %v1182_v7 = vmul.f32 %v2027_v55, %v3110_v21 }
 0x549   :  { %1981 = vmatprep.subr.bf16.mxu1 %v2539_v61 }
 0x54a   :  { %1272 = vmatprep.mubr.f32.mxu1 %v1183_v59 }
 0x54b   :  { %1273 = vmatmul.mubr.f32.gmra.mrb[22].mxu1 %v1182_v7 }
 0x54c   :  { %1983 = vmatpush3.bf16.msra.mxu1 %v2547_v8 }
 0x54d   :  { %1985 = vmatprep.subr.bf16.mxu1 %v2562_v5 }
 0x550   :  { %1987 = vmatpush3.bf16.msra.mxu1 %v2762_v47 }
 0x551   :  { %1989 = vmatprep.subr.bf16.mxu1 %v2767_v1 }
 0x554   :  { %1991 = vmatpush3.bf16.msra.mxu1 %v2785_v22 }
 0x555   :  { %1993 = vmatprep.subr.bf16.mxu1 %v2939_v43 }
 0x558   :  { %1995 = vmatpush3.bf16.msra.mxu1 %v2941_v41 }
 0x55f   :  { %v1149_v13 = vpop.xlane.xlu0 %1148 }
 0x560   :  { %v1158_v28 = vmul.f32 0.00390625, %v1149_v13 }
 0x562   :  { %v1165_v63 = vadd.f32 1e-05, %v1158_v28 }
 0x564   :  { %2028 = vrsqrt.f32 %v1165_v63 }
 0x56e   :  { %v2029_v61 = vpop.eup %2028 }
 0x56f   :  { %v1152_v16 = vpop.xlane.xlu1 %1151  ;;  %v1185_v8 = vmul.f32 %v2029_v61, %v3120_v10  ;;  %v1184_v5 = vmul.f32 %v2029_v61, %v3118_v29 }
 0x570   :  { %v1159_v37 = vmul.f32 0.00390625, %v1152_v16 }
 0x571   :  { %1277 = vmatprep.mubr.f32.mxu1 %v1185_v8 }
 0x572   :  { %v1166_v47 = vadd.f32 1e-05, %v1159_v37  ;;  %1278 = vmatmul.mubr.f32.gmra.mrb[24].mxu1 %v1184_v5 }
 0x574   :  { %2030 = vrsqrt.f32 %v1166_v47 }
 0x57e   :  { %v2031_v1 = vpop.eup %2030 }
 0x57f   :  { %v1187_v43 = vmul.f32 %v2031_v1, %v3128_v17  ;;  %v1186_v41 = vmul.f32 %v2031_v1, %v3126_v33 }
 0x581   :  { %1282 = vmatprep.mubr.f32.mxu1 %v1187_v43 }
 0x582   :  { %1283 = vmatmul.mubr.f32.gmra.mrb[26].mxu1 %v1186_v41 }
 0x60e   :  { %v1730_v22 = vpop.f32.mrb[14].mxu1 }
 0x60f   :  { %v1731_v3 = vpop.f32.mrb[15].mxu1 }
 0x610   :  { %v1732_v57 = vadd.f32 %v1731_v3, %v1730_v22 }
 0x612   :  { %v1255_v21 = vadd.f32 %v1732_v57, %v3015_v11  ;;  %v1733_v58 = vpop.f32.mrb[16].mxu1 }
 0x613   :  { %v1734_v10 = vpop.f32.mrb[17].mxu1 }
 0x614   :  { %v1735_v29 = vadd.f32 %v1734_v10, %v1733_v58  ;;  %1353 = vmatmul.mubr.f32.vlgmr.msra.gmra.mrb[28].mxu0 %v1255_v21 }
 0x615   :  { %1358 = vmatprep.mubr.f32.mxu0 %v3400_v52 }
 0x616   :  { %v1260_v38 = vadd.f32 %v1735_v29, %v3019_v0  ;;  %v1736_v19 = vpop.f32.mrb[18].mxu1 }
 0x617   :  { %v1737_v35 = vpop.f32.mrb[19].mxu1 }
 0x618   :  { %v1738_v17 = vadd.f32 %v1737_v35, %v1736_v19  ;;  %1359 = vmatmul.mubr.f32.gmra.mrb[30].mxu0 %v1260_v38 }
 0x619   :  { %1364 = vmatprep.mubr.f32.mxu0 %v3400_v52 }
 0x61a   :  { %v1265_v33 = vadd.f32 %v1738_v17, %v3026_v32  ;;  %v1739_v4 = vpop.f32.mrb[20].mxu1 }
 0x61b   :  { %v1740_v23 = vpop.f32.mrb[21].mxu1 }
 0x61c   :  { %v1741_v20 = vadd.f32 %v1740_v23, %v1739_v4  ;;  %1365 = vmatmul.mubr.f32.gmra.mrb[32].mxu0 %v1265_v33 }
 0x61d   :  { %1370 = vmatprep.mubr.f32.mxu0 %v3400_v52 }
 0x61e   :  { %v1270_v34 = vadd.f32 %v1741_v20, %v3033_v14  ;;  %v1742_v51 = vpop.f32.mrb[22].mxu1 }
 0x61f   :  { %v1743_v15 = vpop.f32.mrb[23].mxu1 }
 0x620   :  { %v1744_v31 = vadd.f32 %v1743_v15, %v1742_v51  ;;  %1371 = vmatmul.mubr.f32.gmra.mrb[34].mxu0 %v1270_v34 }
 0x621   :  { %1376 = vmatprep.mubr.f32.mxu0 %v3400_v52 }
 0x622   :  { %v1275_v46 = vadd.f32 %v1744_v31, %v3040_v25 }
 0x624   :  { %1377 = vmatmul.mubr.f32.gmra.mrb[36].mxu0 %v1275_v46 }
 0x625   :  { %1382 = vmatprep.mubr.f32.mxu0 %v3400_v52 }
 0x645   :  { %v1745_v44 = vpop.f32.mrb[24].mxu1 }
 0x646   :  { %v1746_v30 = vpop.f32.mrb[25].mxu1 }
 0x647   :  { %v1747_v62 = vadd.f32 %v1746_v30, %v1745_v44 }
 0x649   :  { %v1280_v60 = vadd.f32 %v1747_v62, %v3055_v26 }
 0x64b   :  { %1383 = vmatmul.mubr.f32.gmra.mrb[38].mxu0 %v1280_v60 }
 0x64c   :  { %1388 = vmatprep.mubr.f32.mxu0 %v3400_v52 }
 0x655   :  { %v1748_v54 = vpop.f32.mrb[26].mxu1 }
 0x656   :  { %v1749_v36 = vpop.f32.mrb[27].mxu1 }
 0x657   :  { %v1750_v12 = vadd.f32 %v1749_v36, %v1748_v54 }
 0x659   :  { %v1285_v18 = vadd.f32 %v1750_v12, %v3060_v56 }
 0x65b   :  { %1389 = vmatmul.mubr.f32.gmra.mrb[40].mxu0 %v1285_v18 }
 0x6e7   :  { %v1354_v50 = vpop.f32.mrb[28].mxu0 }
 0x6e8   :  { %v1355_v6 = vadd.f32 %v1354_v50, %v3416_v9  ;;  %v1356_v53 = vpop.f32.mrb[29].mxu0 }
 0x6e9   :  { %v1357_v24 = vadd.f32 %v1356_v53, %v3417_v39 }
 0x6ea   :  { %v1395_v42 = vmax.f32 %v1355_v6, 0.0 }
 0x6eb   :  { %v1396_v2 = vmax.f32 %v1357_v24, 0.0  ;;  %v1360_v27 = vpop.f32.mrb[30].mxu0 }
 0x6ec   :  { %v1361_v45 = vadd.f32 %v1360_v27, %v3416_v9  ;;  %v1362_v40 = vpop.f32.mrb[31].mxu0 }
 0x6ed   :  { %v1363_v52 = vadd.f32 %v1362_v40, %v3417_v39  ;;  %v1409_v48 = vadd.f32 %v1396_v2, %v1395_v42 }
 0x6ee   :  { %v1397_v49 = vmax.f32 %v1361_v45, 0.0 }
 0x6ef   :  { %v1398_v55 = vmax.f32 %v1363_v52, 0.0  ;;  %1410 = vadd.xlane.f32.xlu0 %v1409_v48  ;;  %v1366_v59 = vpop.f32.mrb[32].mxu0 }
 0x6f0   :  { %v1367_v7 = vadd.f32 %v1366_v59, %v3416_v9  ;;  %v1368_v13 = vpop.f32.mrb[33].mxu0 }
 0x6f1   :  { %v1412_v28 = vadd.f32 %v1398_v55, %v1397_v49  ;;  %v1369_v63 = vadd.f32 %v1368_v13, %v3417_v39 }
 0x6f2   :  { %v1399_v61 = vmax.f32 %v1367_v7, 0.0 }
 0x6f3   :  { %v1400_v16 = vmax.f32 %v1369_v63, 0.0  ;;  %1413 = vadd.xlane.f32.xlu1 %v1412_v28  ;;  %v1372_v8 = vpop.f32.mrb[34].mxu0 }
 0x6f4   :  { %v1373_v5 = vadd.f32 %v1372_v8, %v3416_v9  ;;  %v1374_v37 = vpop.f32.mrb[35].mxu0 }
 0x6f5   :  { %v1375_v47 = vadd.f32 %v1374_v37, %v3417_v39  ;;  %v1415_v1 = vadd.f32 %v1400_v16, %v1399_v61 }
 0x6f6   :  { %v1401_v43 = vmax.f32 %v1373_v5, 0.0 }
 0x6f7   :  { %v1402_v41 = vmax.f32 %v1375_v47, 0.0  ;;  %1416 = vadd.xlane.f32.xlu0 %v1415_v1  ;;  %v1378_v22 = vpop.f32.mrb[36].mxu0 }
 0x6f8   :  { %v1379_v3 = vadd.f32 %v1378_v22, %v3416_v9  ;;  %v1380_v57 = vpop.f32.mrb[37].mxu0 }
 0x6f9   :  { %v1418_v21 = vadd.f32 %v1402_v41, %v1401_v43  ;;  %v1381_v58 = vadd.f32 %v1380_v57, %v3417_v39 }
 0x6fa   :  { %v1403_v10 = vmax.f32 %v1379_v3, 0.0 }
 0x6fb   :  { %v1404_v29 = vmax.f32 %v1381_v58, 0.0  ;;  %1419 = vadd.xlane.f32.xlu1 %v1418_v21 }
 0x6fd   :  { %v1421_v38 = vadd.f32 %v1404_v29, %v1403_v10 }
 0x6ff   :  { %1422 = vadd.xlane.f32.xlu0 %v1421_v38 }
 0x71e   :  { %v1384_v19 = vpop.f32.mrb[38].mxu0 }
 0x71f   :  { %v1385_v35 = vadd.f32 %v1384_v19, %v3416_v9  ;;  %v1386_v17 = vpop.f32.mrb[39].mxu0 }
 0x720   :  { %v1387_v33 = vadd.f32 %v1386_v17, %v3417_v39 }
 0x721   :  { %v1405_v4 = vmax.f32 %v1385_v35, 0.0 }
 0x722   :  { %v1406_v23 = vmax.f32 %v1387_v33, 0.0 }
 0x724   :  { %v1424_v20 = vadd.f32 %v1406_v23, %v1405_v4 }
 0x726   :  { %1425 = vadd.xlane.f32.xlu1 %v1424_v20 }
 0x72e   :  { %v1390_v34 = vpop.f32.mrb[40].mxu0 }
 0x72f   :  { %v1391_v51 = vadd.f32 %v1390_v34, %v3416_v9  ;;  %v1392_v15 = vpop.f32.mrb[41].mxu0 }
 0x730   :  { %v1393_v31 = vadd.f32 %v1392_v15, %v3417_v39 }
 0x731   :  { %v1407_v46 = vmax.f32 %v1391_v51, 0.0 }
 0x732   :  { %v1408_v44 = vmax.f32 %v1393_v31, 0.0 }
 0x734   :  { %v1427_v30 = vadd.f32 %v1408_v44, %v1407_v46 }
 0x736   :  { %1428 = vadd.xlane.f32.xlu0 %v1427_v30 }
 0x77c   :  { %v1411_v62 = vpop.xlane.xlu0 %1410 }
 0x77d   :  { %v1430_v60 = vmul.f32 0.00390625, %v1411_v62 }
 0x77f   :  { %v3190_v54 = vsub.f32 %v1395_v42, %v1430_v60  ;;  %v3192_v36 = vsub.f32 %v1396_v2, %v1430_v60 }
 0x780   :  { %v1414_v12 = vpop.xlane.xlu1 %1413 }
 0x781   :  { %v1451_v18 = vmul.f32 %v3190_v54, %v3190_v54  ;;  %v1452_v9 = vmul.f32 %v3192_v36, %v3192_v36  ;;  %v1431_v50 = vmul.f32 0.00390625, %v1414_v12 }
 0x783   :  { %v3198_v6 = vsub.f32 %v1397_v49, %v1431_v50  ;;  %v3200_v39 = vsub.f32 %v1398_v55, %v1431_v50  ;;  %v1465_v53 = vadd.f32 %v1452_v9, %v1451_v18 }
 0x784   :  { %v1417_v24 = vpop.xlane.xlu0 %1416 }
 0x785   :  { %v1432_v27 = vmul.f32 0.00390625, %v1417_v24  ;;  %1466 = vadd.xlane.f32.xlu1 %v1465_v53  ;;  %v1453_v42 = vmul.f32 %v3198_v6, %v3198_v6  ;;  %v1454_v2 = vmul.f32 %v3200_v39, %v3200_v39 }
 0x787   :  { %v3206_v45 = vsub.f32 %v1399_v61, %v1432_v27  ;;  %v3208_v40 = vsub.f32 %v1400_v16, %v1432_v27  ;;  %v1468_v52 = vadd.f32 %v1454_v2, %v1453_v42 }
 0x788   :  { %v1420_v48 = vpop.xlane.xlu1 %1419 }
 0x789   :  { %v1455_v49 = vmul.f32 %v3206_v45, %v3206_v45  ;;  %v1456_v55 = vmul.f32 %v3208_v40, %v3208_v40  ;;  %v1433_v59 = vmul.f32 0.00390625, %v1420_v48  ;;  %1469 = vadd.xlane.f32.xlu0 %v1468_v52 }
 0x78b   :  { %v3214_v7 = vsub.f32 %v1401_v43, %v1433_v59  ;;  %v3216_v13 = vsub.f32 %v1402_v41, %v1433_v59  ;;  %v1471_v28 = vadd.f32 %v1456_v55, %v1455_v49 }
 0x78c   :  { %v1423_v63 = vpop.xlane.xlu0 %1422 }
 0x78d   :  { %v1434_v61 = vmul.f32 0.00390625, %v1423_v63  ;;  %1472 = vadd.xlane.f32.xlu1 %v1471_v28  ;;  %v1457_v16 = vmul.f32 %v3214_v7, %v3214_v7  ;;  %v1458_v8 = vmul.f32 %v3216_v13, %v3216_v13 }
 0x78f   :  { %v3222_v5 = vsub.f32 %v1403_v10, %v1434_v61  ;;  %v3224_v37 = vsub.f32 %v1404_v29, %v1434_v61  ;;  %v1474_v47 = vadd.f32 %v1458_v8, %v1457_v16 }
 0x791   :  { %v1459_v1 = vmul.f32 %v3222_v5, %v3222_v5  ;;  %v1460_v43 = vmul.f32 %v3224_v37, %v3224_v37  ;;  %1475 = vadd.xlane.f32.xlu0 %v1474_v47 }
 0x793   :  { %v1477_v41 = vadd.f32 %v1460_v43, %v1459_v1 }
 0x795   :  { %1478 = vadd.xlane.f32.xlu1 %v1477_v41 }
 0x7b3   :  { %v1426_v22 = vpop.xlane.xlu1 %1425 }
 0x7b4   :  { %v1435_v3 = vmul.f32 0.00390625, %v1426_v22 }
 0x7b6   :  { %v3230_v57 = vsub.f32 %v1405_v4, %v1435_v3  ;;  %v3232_v21 = vsub.f32 %v1406_v23, %v1435_v3 }
 0x7b8   :  { %v1461_v58 = vmul.f32 %v3230_v57, %v3230_v57  ;;  %v1462_v10 = vmul.f32 %v3232_v21, %v3232_v21 }
 0x7ba   :  { %v1480_v29 = vadd.f32 %v1462_v10, %v1461_v58 }
 0x7bc   :  { %1481 = vadd.xlane.f32.xlu0 %v1480_v29 }
 0x7c3   :  { %v1429_v38 = vpop.xlane.xlu0 %1428 }
 0x7c4   :  { %v1436_v19 = vmul.f32 0.00390625, %v1429_v38 }
 0x7c6   :  { %v3238_v35 = vsub.f32 %v1407_v46, %v1436_v19  ;;  %v3240_v17 = vsub.f32 %v1408_v44, %v1436_v19 }
 0x7c8   :  { %v1463_v33 = vmul.f32 %v3238_v35, %v3238_v35  ;;  %v1464_v4 = vmul.f32 %v3240_v17, %v3240_v17 }
 0x7ca   :  { %v1483_v23 = vadd.f32 %v1464_v4, %v1463_v33 }
 0x7cc   :  { %1484 = vadd.xlane.f32.xlu1 %v1483_v23 }
 0x812   :  { %v1467_v20 = vpop.xlane.xlu1 %1466 }
 0x813   :  { %v1486_v34 = vmul.f32 0.00390625, %v1467_v20 }
 0x815   :  { %v1493_v51 = vadd.f32 1e-05, %v1486_v34 }
 0x816   :  { %v1470_v15 = vpop.xlane.xlu0 %1469 }
 0x817   :  { %2032 = vrsqrt.f32 %v1493_v51  ;;  %v1487_v31 = vmul.f32 0.00390625, %v1470_v15 }
 0x819   :  { %v1494_v30 = vadd.f32 1e-05, %v1487_v31 }
 0x81a   :  { %v1473_v62 = vpop.xlane.xlu1 %1472 }
 0x81b   :  { %2034 = vrsqrt.f32 %v1494_v30  ;;  %v1488_v46 = vmul.f32 0.00390625, %v1473_v62 }
 0x81d   :  { %v1495_v44 = vadd.f32 1e-05, %v1488_v46 }
 0x81e   :  { %v1476_v60 = vpop.xlane.xlu0 %1475 }
 0x81f   :  { %2036 = vrsqrt.f32 %v1495_v44  ;;  %v1489_v12 = vmul.f32 0.00390625, %v1476_v60 }
 0x821   :  { %v2033_v18 = vpop.eup %2032  ;;  %v1496_v9 = vadd.f32 1e-05, %v1489_v12 }
 0x822   :  { %v1479_v50 = vpop.xlane.xlu1 %1478  ;;  %v1508_v53 = vmul.f32 %v2033_v18, %v3192_v36  ;;  %v1507_v24 = vmul.f32 %v2033_v18, %v3190_v54 }
 0x823   :  { %2038 = vrsqrt.f32 %v1496_v9  ;;  %v1490_v27 = vmul.f32 0.00390625, %v1479_v50 }
 0x824   :  { %1585 = vmatprep.mubr.f32.mxu1 %v1508_v53 }
 0x825   :  { %v2035_v42 = vpop.eup %2034  ;;  %v1497_v2 = vadd.f32 1e-05, %v1490_v27  ;;  %1586 = vmatmul.mubr.f32.vlgmr.msra.gmra.mrb[28].mxu1 %v1507_v24 }
 0x826   :  { %v1510_v52 = vmul.f32 %v2035_v42, %v3200_v39  ;;  %v1509_v48 = vmul.f32 %v2035_v42, %v3198_v6 }
 0x827   :  { %2040 = vrsqrt.f32 %v1497_v2 }
 0x828   :  { %1590 = vmatprep.mubr.f32.mxu1 %v1510_v52 }
 0x829   :  { %v2037_v49 = vpop.eup %2036  ;;  %1591 = vmatmul.mubr.f32.gmra.mrb[30].mxu1 %v1509_v48 }
 0x82a   :  { %v1512_v55 = vmul.f32 %v2037_v49, %v3208_v40  ;;  %v1511_v36 = vmul.f32 %v2037_v49, %v3206_v45 }
 0x82c   :  { %1595 = vmatprep.mubr.f32.mxu1 %v1512_v55 }
 0x82d   :  { %v2039_v54 = vpop.eup %2038  ;;  %1596 = vmatmul.mubr.f32.gmra.mrb[32].mxu1 %v1511_v36 }
 0x82e   :  { %v1514_v59 = vmul.f32 %v2039_v54, %v3216_v13  ;;  %v1513_v28 = vmul.f32 %v2039_v54, %v3214_v7 }
 0x830   :  { %1600 = vmatprep.mubr.f32.mxu1 %v1514_v59 }
 0x831   :  { %v2041_v63 = vpop.eup %2040  ;;  %1601 = vmatmul.mubr.f32.gmra.mrb[34].mxu1 %v1513_v28 }
 0x832   :  { %v1516_v6 = vmul.f32 %v2041_v63, %v3224_v37  ;;  %v1515_v39 = vmul.f32 %v2041_v63, %v3222_v5 }
 0x834   :  { %1605 = vmatprep.mubr.f32.mxu1 %v1516_v6 }
 0x835   :  { %1606 = vmatmul.mubr.f32.gmra.mrb[36].mxu1 %v1515_v39 }
 0x849   :  { %v1482_v61 = vpop.xlane.xlu0 %1481 }
 0x84a   :  { %v1491_v40 = vmul.f32 0.00390625, %v1482_v61 }
 0x84c   :  { %v1498_v16 = vadd.f32 1e-05, %v1491_v40 }
 0x84e   :  { %2042 = vrsqrt.f32 %v1498_v16 }
 0x858   :  { %v2043_v45 = vpop.eup %2042 }
 0x859   :  { %v1485_v8 = vpop.xlane.xlu1 %1484  ;;  %v1518_v47 = vmul.f32 %v2043_v45, %v3232_v21  ;;  %v1517_v13 = vmul.f32 %v2043_v45, %v3230_v57 }
 0x85a   :  { %v1492_v7 = vmul.f32 0.00390625, %v1485_v8 }
 0x85b   :  { %1610 = vmatprep.mubr.f32.mxu1 %v1518_v47 }
 0x85c   :  { %v1499_v1 = vadd.f32 1e-05, %v1492_v7  ;;  %1611 = vmatmul.mubr.f32.gmra.mrb[38].mxu1 %v1517_v13 }
 0x85e   :  { %2044 = vrsqrt.f32 %v1499_v1 }
 0x868   :  { %v2045_v37 = vpop.eup %2044 }
 0x869   :  { %v1520_v5 = vmul.f32 %v2045_v37, %v3240_v17  ;;  %v1519_v43 = vmul.f32 %v2045_v37, %v3238_v35 }
 0x86b   :  { %1615 = vmatprep.mubr.f32.mxu1 %v1520_v5 }
 0x86c   :  { %1616 = vmatmul.mubr.f32.gmra.mrb[40].mxu1 %v1519_v43 }
 0x8f8   :  { %v1783_v41 = vpop.f32.mrb[28].mxu1 }
 0x8f9   :  { %v1784_v22 = vpop.f32.mrb[29].mxu1 }
 0x8fa   :  { %v1785_v3 = vadd.f32 %v1784_v22, %v1783_v41 }
 0x8fc   :  { %v1588_v58 = vadd.f32 %v1785_v3, %v3015_v11  ;;  %v1786_v21 = vpop.f32.mrb[30].mxu1 }
 0x8fd   :  { %v1787_v10 = vpop.f32.mrb[31].mxu1 }
 0x8fe   :  { %1621 = vst [vmem:[#allocation5] sm:$0xff] %v1588_v58  ;;  %v1788_v57 = vadd.f32 %v1787_v10, %v1786_v21 }
 0x900   :  { %v1593_v29 = vadd.f32 %v1788_v57, %v3019_v0  ;;  %v1789_v38 = vpop.f32.mrb[32].mxu1 }
 0x901   :  { %v1790_v19 = vpop.f32.mrb[33].mxu1 }
 0x902   :  { %1622 = vst [vmem:[#allocation5 + $0x8] sm:$0xff] %v1593_v29  ;;  %v1791_v33 = vadd.f32 %v1790_v19, %v1789_v38 }
 0x904   :  { %v1598_v17 = vadd.f32 %v1791_v33, %v3026_v32  ;;  %v1792_v35 = vpop.f32.mrb[34].mxu1 }
 0x905   :  { %v1793_v4 = vpop.f32.mrb[35].mxu1 }
 0x906   :  { %1623 = vst [vmem:[#allocation5 + $0x10] sm:$0xff] %v1598_v17  ;;  %v1794_v23 = vadd.f32 %v1793_v4, %v1792_v35 }
 0x908   :  { %v1603_v20 = vadd.f32 %v1794_v23, %v3033_v14  ;;  %v1795_v34 = vpop.f32.mrb[36].mxu1 }
 0x909   :  { %v1796_v11 = vpop.f32.mrb[37].mxu1 }
 0x90a   :  { %1624 = vst [vmem:[#allocation5 + $0x18] sm:$0xff] %v1603_v20  ;;  %v1797_v51 = vadd.f32 %v1796_v11, %v1795_v34 }
 0x90c   :  { %v1608_v15 = vadd.f32 %v1797_v51, %v3040_v25 }
 0x90e   :  { %1625 = vst [vmem:[#allocation5 + $0x20] sm:$0xff] %v1608_v15 }
 0x92f   :  { %v1798_v0 = vpop.f32.mrb[38].mxu1 }
 0x930   :  { %v1799_v31 = vpop.f32.mrb[39].mxu1 }
 0x931   :  { %v1800_v30 = vadd.f32 %v1799_v31, %v1798_v0 }
 0x933   :  { %v1613_v62 = vadd.f32 %v1800_v30, %v3055_v26 }
 0x935   :  { %1626 = vst [vmem:[#allocation5 + $0x28] sm:$0xff] %v1613_v62 }
 0x93f   :  { %v1801_v32 = vpop.f32.mrb[40].mxu1 }
 0x940   :  { %v1802_v46 = vpop.f32.mrb[41].mxu1 }
 0x941   :  { %v1803_v44 = vadd.f32 %v1802_v46, %v1801_v32 }
 0x943   :  { %v1618_v14 = vadd.f32 %v1803_v44, %v3060_v56 }
 0x945   :  { %1627 = vst [vmem:[#allocation5 + $0x30] sm:$0xff] %v1618_v14 }
 0x946   :  { %2086 = shalt.err (!%p2083_p12)
}
 0x947   :  { %s2087_s18 = scalar_lea.hbm %s3289_s7, 896 }
 0x948   :  { %p2088_p13 = scmp.ne.s32.totalorder %s3289_s7, %s2087_s18  ;;  %p2091_p0 = scmp.lt.u32.totalorder %s2087_s18, %s3289_s7 }
 0x94a   :  { %p2093_p1 = pnand %p2091_p0, %p2088_p13 }
 0x94c   :  { %2096 = shalt.err (!%p2093_p1)
}
 0x94d   :  { %1639 = dma.vmem_to_hbm [thread:$0]  %s1634_s15, 896, %s3289_s7, [#allocation4], %s2102_s11, %s2102_s11, %s2103_s12  }
 0x94e   :  { %2099 = dma.done.wait [#allocation4], 896  }
 0x94f   :  { %2100 = vsyncadd [#allocation4], 4294966400 }
 0x950   :  { %1643 = vsyncpa [#allocation3], 1 }
 0x951   :  { %1644 = vsyncpa [#allocation4], 1 }

</bundles_post_ra>
